<compile_context>
chip_gen: v6e
topology: v6e:2x2x1
jax: 0.10.0
libtpu: 0.0.40
codegen_flags: <defaults>
</compile_context>

<pallas_src>
import functools

import jax
import jax.numpy as jnp
from jax.experimental import pallas as pl
from jax.experimental.pallas import tpu as pltpu

EMBED_CHAR = 50   # self.embed_char_size (fixed in the module)
KERNEL_K = 5      # cs224n a5 CNN kernel width
PAD_IDX = 0       # vocab.char2id['<pad>']
LANE = 128


def _round_up(x, m):
    return ((x + m - 1) // m) * m


def _char_cnn_highway_kernel(ids_ref, wbig_ref, bconv_ref, wcat_ref, bcat_ref,
                             o_ref, *, char_vocab, time_chunk):
    """Fused char-CNN (embedding folded into conv weight) + max-over-time + Highway.

    ids_ref   : (TN, L)              int32 character ids for TN words
    wbig_ref  : (KV_PAD, E_PAD)      bf16, row k*V+v = char_embed[v] @ Wconv[:,:,k]^T
    bconv_ref : (1, E_PAD)           f32 conv bias (zero padded)
    wcat_ref  : (E_PAD, 2*E_PAD)     bf16 [wproj | wgate] (zero padded)
    bcat_ref  : (1, 2*E_PAD)         f32  [bproj | bgate]
    o_ref     : (TN, E_PAD)          f32
    """
    tn, seq_l = ids_ref.shape
    kv_pad, e_pad = wbig_ref.shape
    l_out = seq_l - KERNEL_K + 1

    ids = ids_ref[...]
    wbig = wbig_ref[...]

    def chunk_max(t0, tc):
        # Multi-hot patch rows: a 1.0 at column k*V + ids[n, t0+t+k] for each k.
        # The K per-k column ranges are disjoint, so OR of the compares is exact,
        # and 0/1 values are exact in bf16.
        lane = jax.lax.broadcasted_iota(jnp.int32, (tn, tc, kv_pad), 2)
        hit = None
        for k in range(KERNEL_K):
            idk = ids[:, t0 + k:t0 + k + tc] + k * char_vocab        # (TN, tc)
            m = lane == idk[:, :, None]
            hit = m if hit is None else jnp.logical_or(hit, m)
        patches = hit.astype(jnp.bfloat16)                           # (TN, tc, KV_PAD)
        c = jnp.dot(patches.reshape(tn * tc, kv_pad), wbig,
                    preferred_element_type=jnp.float32)              # (TN*tc, E_PAD) f32
        if tc == 1:
            return c
        return jnp.max(c.reshape(tn, tc, e_pad), axis=1)             # (TN, E_PAD)

    # Running max-over-time in chunks: peak VMEM ~independent of L_out.
    h = None
    for t0 in range(0, l_out, time_chunk):
        m = chunk_max(t0, min(time_chunk, l_out - t0))
        h = m if h is None else jnp.maximum(h, m)

    # Conv bias hoisted out of the max (bias is position-invariant; ReLU/max monotone).
    h = jnp.maximum(h + bconv_ref[...], 0.0)                         # (TN, E_PAD) f32

    # Highway: proj and gate fused into one bf16 matmul, f32 accumulate/combine.
    hw = jnp.dot(h.astype(jnp.bfloat16), wcat_ref[...],
                 preferred_element_type=jnp.float32) + bcat_ref[...]  # (TN, 2*E_PAD)
    proj = jnp.maximum(hw[:, :e_pad], 0.0)
    gate = jax.nn.sigmoid(hw[:, e_pad:])
    out = h + gate * (proj - h)

    # Dropout(p=0.3) is identity in eval mode.
    # TODO(synk): training-mode dropout mask (pltpu.prng_seed + prng_random_bits) not implemented.
    o_ref[...] = out.astype(o_ref.dtype)


def model_embeddings_forward(input_ids, params, *, tile_n=256, time_chunk=8):
    """input_ids: (src_len, batch, max_word_len) int32 -> (src_len, batch, embed_size) f32."""
    src_len, b, max_word_len = input_ids.shape
    assert max_word_len >= KERNEL_K
    n = src_len * b
    e = int(params["embed_size"])
    v = int(params["char_vocab_size"])

    wbig = params["wbig_pad"]                      # (KV_PAD, E_PAD)  bf16
    bconv = params["bconv_pad"]                    # (1, E_PAD)       f32
    wcat = params["whighway_pad"]                  # (E_PAD, 2*E_PAD) bf16
    bcat = params["bhighway_pad"]                  # (1, 2*E_PAD)     f32
    kv_pad, e_pad = wbig.shape
    l_out = max_word_len - KERNEL_K + 1

    # Only int32 ids cross HBM per tile (no materialized embeddings / im2col).
    ids = input_ids.reshape(n, max_word_len).astype(jnp.int32)
    # Tile the word axis (multiple of 8); cap tile so the grid has >= 2 tiles
    # when possible so both v7x TensorCores get work.
    tn = max(8, min(tile_n, _round_up(-(-n // 2), 8)))
    n_pad = _round_up(n, tn)
    if n_pad != n:
        ids = jnp.pad(ids, ((0, n_pad - n), (0, 0)), constant_values=PAD_IDX)

    kernel = functools.partial(_char_cnn_highway_kernel,
                               char_vocab=v, time_chunk=int(time_chunk))

    cost = pl.CostEstimate(
        flops=int(2 * n_pad * (l_out * kv_pad * e_pad + 2 * e_pad * e_pad)),
        transcendentals=int(n_pad * e_pad),                       # sigmoid
        bytes_accessed=int(ids.size * 4 + wbig.size * 2 + wcat.size * 2
                           + (bconv.size + bcat.size) * 4 + n_pad * e_pad * 4),
    )

    def launch(weight_mode):
        def wspec(shape):
            # Grid-invariant weights: constant index_map; single-buffer when allowed.
            return pl.BlockSpec(shape, lambda i: (0, 0), pipeline_mode=weight_mode)

        call = pl.pallas_call(
            kernel,
            out_shape=jax.ShapeDtypeStruct((n_pad, e_pad), jnp.float32),
            grid_spec=pltpu.PrefetchScalarGridSpec(
                num_scalar_prefetch=0,
                grid=(n_pad // tn,),
                in_specs=[
                    pl.BlockSpec((tn, max_word_len), lambda i: (i, 0)),   # ids (tiled)
                    wspec((kv_pad, e_pad)),                               # folded conv weight
                    wspec((1, e_pad)),                                    # conv bias
                    wspec((e_pad, 2 * e_pad)),                            # highway proj|gate weight
                    wspec((1, 2 * e_pad)),                                # highway proj|gate bias
                ],
                out_specs=pl.BlockSpec((tn, e_pad), lambda i: (i, 0)),
            ),
            compiler_params=pltpu.CompilerParams(
                dimension_semantics=("parallel",),
                vmem_limit_bytes=48 * 1024 * 1024),
            cost_estimate=cost,
        )
        return jax.block_until_ready(call(ids, wbig, bconv, wcat, bcat))

    try:
        out = launch(pl.Buffered(1))        # single-buffer the resident weights
    except Exception:
        # TODO(synk): fallback to default double-buffering on jax versions where
        # pl.Buffered(1) is not accepted for the auto-pipeline.
        out = launch(None)

    return out[:n, :e].reshape(src_len, b, e)


def reference_forward(input_ids, params):
    """Pure-JAX f32 reference mirroring the PyTorch module (eval mode)."""
    src_len, b, max_word_len = input_ids.shape
    n = src_len * b
    emb = params["char_embed"][input_ids]                            # (src_len, b, L, C)
    x_ncw = emb.reshape(n, max_word_len, EMBED_CHAR).transpose(0, 2, 1)
    conv = jax.lax.conv_general_dilated(
        x_ncw, params["wconv_pt"], window_strides=(1,), padding="VALID",
        dimension_numbers=("NCH", "OIH", "NCH"))                     # (N, E, L_out)
    conv = conv + params["bconv"].reshape(1, -1, 1)
    h = jnp.max(jnp.maximum(conv, 0.0), axis=-1)                     # (N, E)
    proj = jnp.maximum(h @ params["wproj"] + params["bproj"], 0.0)
    gate = jax.nn.sigmoid(h @ params["wgate"] + params["bgate"])
    out = gate * proj + (1.0 - gate) * h
    return out.reshape(src_len, b, -1)


def init_params(key, vocab_size, embed_size):
    ks = jax.random.split(key, 7)
    char_embed = 0.1 * jax.random.normal(ks[0], (vocab_size, EMBED_CHAR), jnp.float32)
    char_embed = char_embed.at[PAD_IDX].set(0.0)          # padding_idx row is zero
    wconv_pt = 0.1 * jax.random.normal(ks[1], (embed_size, EMBED_CHAR, KERNEL_K), jnp.float32)
    bconv = 0.1 * jax.random.normal(ks[2], (1, embed_size), jnp.float32)
    wproj = 0.1 * jax.random.normal(ks[3], (embed_size, embed_size), jnp.float32)
    bproj = 0.1 * jax.random.normal(ks[4], (1, embed_size), jnp.float32)
    wgate = 0.1 * jax.random.normal(ks[5], (embed_size, embed_size), jnp.float32)
    bgate = 0.1 * jax.random.normal(ks[6], (1, embed_size), jnp.float32)

    # --- kernel-ready fused / lane-padded / bf16 weights ---------------------
    e_pad = _round_up(embed_size, LANE)           # lane-dense output / MXU columns
    kv = KERNEL_K * vocab_size
    kv_pad = _round_up(kv, LANE)                  # aligned contraction dim

    # Fold char-embedding table into the conv weight (computed in f32, stored bf16):
    #   W_big[k*V + v, :] = char_embed[v, :] @ Wconv[:, :, k]^T
    wbig = jnp.concatenate(
        [char_embed @ wconv_pt[:, :, k].T for k in range(KERNEL_K)], axis=0)  # (K*V, E)
    wbig_pad = (jnp.zeros((kv_pad, e_pad), jnp.float32)
                .at[:kv, :embed_size].set(wbig).astype(jnp.bfloat16))

    bconv_pad = jnp.zeros((1, e_pad), jnp.float32).at[:, :embed_size].set(bconv)
    wproj_pad = jnp.zeros((e_pad, e_pad), jnp.float32).at[:embed_size, :embed_size].set(wproj)
    wgate_pad = jnp.zeros((e_pad, e_pad), jnp.float32).at[:embed_size, :embed_size].set(wgate)
    whighway_pad = jnp.concatenate([wproj_pad, wgate_pad], axis=1).astype(jnp.bfloat16)
    bhighway_pad = (jnp.zeros((1, 2 * e_pad), jnp.float32)
                    .at[:, :embed_size].set(bproj)
                    .at[:, e_pad:e_pad + embed_size].set(bgate))

    return dict(
        embed_size=embed_size, char_vocab_size=vocab_size,
        # original (reference) parameters
        char_embed=char_embed, wconv_pt=wconv_pt, bconv=bconv,
        wproj=wproj, bproj=bproj, wgate=wgate, bgate=bgate,
        # kernel-ready parameters
        wbig_pad=wbig_pad, bconv_pad=bconv_pad,
        whighway_pad=whighway_pad, bhighway_pad=bhighway_pad,
    )


if __name__ == "__main__":
    key = jax.random.PRNGKey(0)
    k_param, k_input = jax.random.split(key)

    src_len, batch, max_word_len = 5, 3, 12
    vocab_size, embed_size = 30, 32

    params = init_params(k_param, vocab_size, embed_size)
    input_ids = jax.random.randint(
        k_input, (src_len, batch, max_word_len), 0, vocab_size, dtype=jnp.int32)

    # tile_n=8 keeps the demo tiny while still exercising a multi-step grid
    # (n=15 -> padded to 16 -> grid=(2,)) including ragged-tail padding.
    # Real workloads: tile_n=256 (v7x-VMEM-safe), 512-1024 on v5e/v6e with a
    # larger vmem_limit_bytes.
    out = model_embeddings_forward(input_ids, params, tile_n=8)
    out = jax.block_until_ready(out)

    ref = jax.block_until_ready(reference_forward(input_ids, params))
    assert out.shape == (src_len, batch, embed_size), out.shape
    # Tolerance accounts for bf16 matmul *operands* (accumulation stays f32);
    # with f32 weights this kernel matches the reference to 1e-4.
    assert jnp.allclose(out, ref, rtol=2e-2, atol=2e-2), \
        f"max abs diff {jnp.max(jnp.abs(out - ref))}"

    print("KERNEL_OK")
</pallas_src>

<mosaic_0001>
module attributes {stable_mosaic.version = 11 : i64} {
  func.func @_char_cnn_highway_kernel(%arg0: i32, %arg1: memref<8x12xi32, #tpu.memory_space<vmem>>, %arg2: memref<256x128xbf16, #tpu.memory_space<vmem>>, %arg3: memref<1x128xf32, #tpu.memory_space<vmem>>, %arg4: memref<128x256xbf16, #tpu.memory_space<vmem>>, %arg5: memref<1x256xf32, #tpu.memory_space<vmem>>, %arg6: memref<8x128xf32, #tpu.memory_space<vmem>>) attributes {dimension_semantics = [#tpu.dimension_semantics<parallel>], iteration_bounds = array<i64: 2>, scalar_prefetch = 0 : i64, scratch_operands = 0 : i64, tpu.core_type = #tpu.core_type<tc>, window_params = [{transform_indices = @transform_0, window_bounds = array<i64: 8, 12>}, {pipeline_mode = #tpu.pipeline_mode<synchronous>, transform_indices = @transform_1, window_bounds = array<i64: 256, 128>}, {pipeline_mode = #tpu.pipeline_mode<synchronous>, transform_indices = @transform_2, window_bounds = array<i64: 1, 128>}, {pipeline_mode = #tpu.pipeline_mode<synchronous>, transform_indices = @transform_3, window_bounds = array<i64: 128, 256>}, {pipeline_mode = #tpu.pipeline_mode<synchronous>, transform_indices = @transform_4, window_bounds = array<i64: 1, 256>}, {transform_indices = @transform_5, window_bounds = array<i64: 8, 128>}]} {
    %c0 = arith.constant 0 : index
    %c0_0 = arith.constant 0 : index
    %0 = vector.load %arg1[%c0, %c0_0] : memref<8x12xi32, #tpu.memory_space<vmem>>, vector<8x12xi32>
    %c0_1 = arith.constant 0 : index
    %c0_2 = arith.constant 0 : index
    %1 = vector.load %arg2[%c0_1, %c0_2] : memref<256x128xbf16, #tpu.memory_space<vmem>>, vector<256x128xbf16>
    %2 = tpu.iota {dimensions = array<i32: 2>} : vector<8x8x256xi32>
    %3 = vector.extract_strided_slice %0 {offsets = [0, 0], sizes = [8, 8], strides = [1, 1]} : vector<8x12xi32> to vector<8x8xi32>
    %c0_i32 = arith.constant 0 : i32
    %4 = vector.broadcast %c0_i32 : i32 to vector<8x8xi32>
    %5 = arith.addi %3, %4 : vector<8x8xi32>
    %6 = vector.shape_cast %5 : vector<8x8xi32> to vector<8x8x1xi32>
    %7 = vector.broadcast %6 : vector<8x8x1xi32> to vector<8x8x256xi32>
    %8 = arith.cmpi eq, %2, %7 : vector<8x8x256xi32>
    %9 = vector.extract_strided_slice %0 {offsets = [0, 1], sizes = [8, 8], strides = [1, 1]} : vector<8x12xi32> to vector<8x8xi32>
    %c30_i32 = arith.constant 30 : i32
    %10 = vector.broadcast %c30_i32 : i32 to vector<8x8xi32>
    %11 = arith.addi %9, %10 : vector<8x8xi32>
    %12 = vector.shape_cast %11 : vector<8x8xi32> to vector<8x8x1xi32>
    %13 = vector.broadcast %12 : vector<8x8x1xi32> to vector<8x8x256xi32>
    %14 = arith.cmpi eq, %2, %13 : vector<8x8x256xi32>
    %15 = arith.ori %8, %14 : vector<8x8x256xi1>
    %16 = vector.extract_strided_slice %0 {offsets = [0, 2], sizes = [8, 8], strides = [1, 1]} : vector<8x12xi32> to vector<8x8xi32>
    %c60_i32 = arith.constant 60 : i32
    %17 = vector.broadcast %c60_i32 : i32 to vector<8x8xi32>
    %18 = arith.addi %16, %17 : vector<8x8xi32>
    %19 = vector.shape_cast %18 : vector<8x8xi32> to vector<8x8x1xi32>
    %20 = vector.broadcast %19 : vector<8x8x1xi32> to vector<8x8x256xi32>
    %21 = arith.cmpi eq, %2, %20 : vector<8x8x256xi32>
    %22 = arith.ori %15, %21 : vector<8x8x256xi1>
    %23 = vector.extract_strided_slice %0 {offsets = [0, 3], sizes = [8, 8], strides = [1, 1]} : vector<8x12xi32> to vector<8x8xi32>
    %c90_i32 = arith.constant 90 : i32
    %24 = vector.broadcast %c90_i32 : i32 to vector<8x8xi32>
    %25 = arith.addi %23, %24 : vector<8x8xi32>
    %26 = vector.shape_cast %25 : vector<8x8xi32> to vector<8x8x1xi32>
    %27 = vector.broadcast %26 : vector<8x8x1xi32> to vector<8x8x256xi32>
    %28 = arith.cmpi eq, %2, %27 : vector<8x8x256xi32>
    %29 = arith.ori %22, %28 : vector<8x8x256xi1>
    %30 = vector.extract_strided_slice %0 {offsets = [0, 4], sizes = [8, 8], strides = [1, 1]} : vector<8x12xi32> to vector<8x8xi32>
    %c120_i32 = arith.constant 120 : i32
    %31 = vector.broadcast %c120_i32 : i32 to vector<8x8xi32>
    %32 = arith.addi %30, %31 : vector<8x8xi32>
    %33 = vector.shape_cast %32 : vector<8x8xi32> to vector<8x8x1xi32>
    %34 = vector.broadcast %33 : vector<8x8x1xi32> to vector<8x8x256xi32>
    %35 = arith.cmpi eq, %2, %34 : vector<8x8x256xi32>
    %36 = arith.ori %29, %35 : vector<8x8x256xi1>
    %37 = arith.extui %36 : vector<8x8x256xi1> to vector<8x8x256xi32>
    %38 = arith.sitofp %37 : vector<8x8x256xi32> to vector<8x8x256xf32>
    %39 = arith.truncf %38 : vector<8x8x256xf32> to vector<8x8x256xbf16>
    %40 = vector.shape_cast %39 : vector<8x8x256xbf16> to vector<64x256xbf16>
    %cst = arith.constant dense<0.000000e+00> : vector<64x128xf32>
    %41 = tpu.matmul %40, %1, %cst {dimension_numbers = #tpu.dot_dimension_numbers<[1], [0], [0], [1], [0, 0, 1, 1], [], []>} : vector<64x256xbf16>, vector<256x128xbf16>, vector<64x128xf32> -> vector<64x128xf32>
    %42 = vector.shape_cast %41 : vector<64x128xf32> to vector<8x8x128xf32>
    %cst_3 = arith.constant dense<0xFF800000> : vector<8x128xf32>
    %43 = vector.multi_reduction <maximumf>, %42, %cst_3 [1] : vector<8x8x128xf32> to vector<8x128xf32>
    %c0_4 = arith.constant 0 : index
    %c0_5 = arith.constant 0 : index
    %44 = vector.load %arg3[%c0_4, %c0_5] : memref<1x128xf32, #tpu.memory_space<vmem>>, vector<1x128xf32>
    %45 = vector.broadcast %44 : vector<1x128xf32> to vector<8x128xf32>
    %46 = arith.addf %43, %45 : vector<8x128xf32>
    %cst_6 = arith.constant 0.000000e+00 : f32
    %47 = vector.broadcast %cst_6 : f32 to vector<8x128xf32>
    %48 = arith.maximumf %46, %47 : vector<8x128xf32>
    %49 = arith.truncf %48 : vector<8x128xf32> to vector<8x128xbf16>
    %c0_7 = arith.constant 0 : index
    %c0_8 = arith.constant 0 : index
    %50 = vector.load %arg4[%c0_7, %c0_8] : memref<128x256xbf16, #tpu.memory_space<vmem>>, vector<128x256xbf16>
    %cst_9 = arith.constant dense<0.000000e+00> : vector<8x256xf32>
    %51 = tpu.matmul %49, %50, %cst_9 {dimension_numbers = #tpu.dot_dimension_numbers<[1], [0], [0], [1], [0, 0, 1, 1], [], []>} : vector<8x128xbf16>, vector<128x256xbf16>, vector<8x256xf32> -> vector<8x256xf32>
    %c0_10 = arith.constant 0 : index
    %c0_11 = arith.constant 0 : index
    %52 = vector.load %arg5[%c0_10, %c0_11] : memref<1x256xf32, #tpu.memory_space<vmem>>, vector<1x256xf32>
    %53 = vector.broadcast %52 : vector<1x256xf32> to vector<8x256xf32>
    %54 = arith.addf %51, %53 : vector<8x256xf32>
    %55 = vector.extract_strided_slice %54 {offsets = [0, 0], sizes = [8, 128], strides = [1, 1]} : vector<8x256xf32> to vector<8x128xf32>
    %cst_12 = arith.constant 0.000000e+00 : f32
    %56 = vector.broadcast %cst_12 : f32 to vector<8x128xf32>
    %57 = arith.maximumf %55, %56 : vector<8x128xf32>
    %58 = vector.extract_strided_slice %54 {offsets = [0, 128], sizes = [8, 128], strides = [1, 1]} : vector<8x256xf32> to vector<8x128xf32>
    %59 = arith.negf %58 : vector<8x128xf32>
    %60 = math.exp %59 : vector<8x128xf32>
    %cst_13 = arith.constant 1.000000e+00 : f32
    %61 = vector.broadcast %cst_13 : f32 to vector<8x128xf32>
    %62 = arith.addf %61, %60 : vector<8x128xf32>
    %63 = arith.divf %61, %62 : vector<8x128xf32>
    %64 = arith.subf %57, %48 : vector<8x128xf32>
    %65 = arith.mulf %63, %64 : vector<8x128xf32>
    %66 = arith.addf %48, %65 : vector<8x128xf32>
    %c0_14 = arith.constant 0 : index
    %c0_15 = arith.constant 0 : index
    %67 = vector.load %arg6[%c0_14, %c0_15] : memref<8x128xf32, #tpu.memory_space<vmem>>, vector<8x128xf32>
    tpu.vector_store %arg6[%c0_14, %c0_15], %66 {strides = array<i32>} : memref<8x128xf32, #tpu.memory_space<vmem>>, vector<8x128xf32>,
    return
  }
  func.func @transform_0(%arg0: i32) -> (i32, i32) {
    %c0_i32 = arith.constant 0 : i32
    %c0_i32_0 = arith.constant 0 : i32
    return %arg0, %c0_i32 : i32, i32
  }
  func.func @transform_1(%arg0: i32) -> (i32, i32) {
    %c0_i32 = arith.constant 0 : i32
    %c0_i32_0 = arith.constant 0 : i32
    %c0_i32_1 = arith.constant 0 : i32
    return %c0_i32, %c0_i32_0 : i32, i32
  }
  func.func @transform_2(%arg0: i32) -> (i32, i32) {
    %c0_i32 = arith.constant 0 : i32
    %c0_i32_0 = arith.constant 0 : i32
    %c0_i32_1 = arith.constant 0 : i32
    return %c0_i32, %c0_i32_0 : i32, i32
  }
  func.func @transform_3(%arg0: i32) -> (i32, i32) {
    %c0_i32 = arith.constant 0 : i32
    %c0_i32_0 = arith.constant 0 : i32
    %c0_i32_1 = arith.constant 0 : i32
    return %c0_i32, %c0_i32_0 : i32, i32
  }
  func.func @transform_4(%arg0: i32) -> (i32, i32) {
    %c0_i32 = arith.constant 0 : i32
    %c0_i32_0 = arith.constant 0 : i32
    %c0_i32_1 = arith.constant 0 : i32
    return %c0_i32, %c0_i32_0 : i32, i32
  }
  func.func @transform_5(%arg0: i32) -> (i32, i32) {
    %c0_i32 = arith.constant 0 : i32
    %c0_i32_0 = arith.constant 0 : i32
    return %arg0, %c0_i32 : i32, i32
  }
}

module attributes {stable_mosaic.version = 11 : i64} {
  func.func @_char_cnn_highway_kernel(%arg0: i32, %arg1: memref<8x12xi32, #tpu.memory_space<vmem>>, %arg2: memref<256x128xbf16, #tpu.memory_space<vmem>>, %arg3: memref<1x128xf32, #tpu.memory_space<vmem>>, %arg4: memref<128x256xbf16, #tpu.memory_space<vmem>>, %arg5: memref<1x256xf32, #tpu.memory_space<vmem>>, %arg6: memref<8x128xf32, #tpu.memory_space<vmem>>) attributes {dimension_semantics = [#tpu.dimension_semantics<parallel>], iteration_bounds = array<i64: 2>, scalar_prefetch = 0 : i64, scratch_operands = 0 : i64, tpu.core_type = #tpu.core_type<tc>, window_params = [{transform_indices = @transform_0, window_bounds = array<i64: 8, 12>}, {pipeline_mode = #tpu.pipeline_mode<synchronous>, transform_indices = @transform_1, window_bounds = array<i64: 256, 128>}, {pipeline_mode = #tpu.pipeline_mode<synchronous>, transform_indices = @transform_2, window_bounds = array<i64: 1, 128>}, {pipeline_mode = #tpu.pipeline_mode<synchronous>, transform_indices = @transform_3, window_bounds = array<i64: 128, 256>}, {pipeline_mode = #tpu.pipeline_mode<synchronous>, transform_indices = @transform_4, window_bounds = array<i64: 1, 256>}, {transform_indices = @transform_5, window_bounds = array<i64: 8, 128>}]} {
    %c0 = arith.constant 0 : index
    %c0_0 = arith.constant 0 : index
    %0 = vector.load %arg1[%c0, %c0_0] : memref<8x12xi32, #tpu.memory_space<vmem>>, vector<8x12xi32>
    %c0_1 = arith.constant 0 : index
    %c0_2 = arith.constant 0 : index
    %1 = vector.load %arg2[%c0_1, %c0_2] : memref<256x128xbf16, #tpu.memory_space<vmem>>, vector<256x128xbf16>
    %2 = tpu.iota {dimensions = array<i32: 2>} : vector<8x8x256xi32>
    %3 = vector.extract_strided_slice %0 {offsets = [0, 0], sizes = [8, 8], strides = [1, 1]} : vector<8x12xi32> to vector<8x8xi32>
    %c0_i32 = arith.constant 0 : i32
    %4 = vector.broadcast %c0_i32 : i32 to vector<8x8xi32>
    %5 = arith.addi %3, %4 : vector<8x8xi32>
    %6 = vector.shape_cast %5 : vector<8x8xi32> to vector<8x8x1xi32>
    %7 = vector.broadcast %6 : vector<8x8x1xi32> to vector<8x8x256xi32>
    %8 = arith.cmpi eq, %2, %7 : vector<8x8x256xi32>
    %9 = vector.extract_strided_slice %0 {offsets = [0, 1], sizes = [8, 8], strides = [1, 1]} : vector<8x12xi32> to vector<8x8xi32>
    %c30_i32 = arith.constant 30 : i32
    %10 = vector.broadcast %c30_i32 : i32 to vector<8x8xi32>
    %11 = arith.addi %9, %10 : vector<8x8xi32>
    %12 = vector.shape_cast %11 : vector<8x8xi32> to vector<8x8x1xi32>
    %13 = vector.broadcast %12 : vector<8x8x1xi32> to vector<8x8x256xi32>
    %14 = arith.cmpi eq, %2, %13 : vector<8x8x256xi32>
    %15 = arith.ori %8, %14 : vector<8x8x256xi1>
    %16 = vector.extract_strided_slice %0 {offsets = [0, 2], sizes = [8, 8], strides = [1, 1]} : vector<8x12xi32> to vector<8x8xi32>
    %c60_i32 = arith.constant 60 : i32
    %17 = vector.broadcast %c60_i32 : i32 to vector<8x8xi32>
    %18 = arith.addi %16, %17 : vector<8x8xi32>
    %19 = vector.shape_cast %18 : vector<8x8xi32> to vector<8x8x1xi32>
    %20 = vector.broadcast %19 : vector<8x8x1xi32> to vector<8x8x256xi32>
    %21 = arith.cmpi eq, %2, %20 : vector<8x8x256xi32>
    %22 = arith.ori %15, %21 : vector<8x8x256xi1>
    %23 = vector.extract_strided_slice %0 {offsets = [0, 3], sizes = [8, 8], strides = [1, 1]} : vector<8x12xi32> to vector<8x8xi32>
    %c90_i32 = arith.constant 90 : i32
    %24 = vector.broadcast %c90_i32 : i32 to vector<8x8xi32>
    %25 = arith.addi %23, %24 : vector<8x8xi32>
    %26 = vector.shape_cast %25 : vector<8x8xi32> to vector<8x8x1xi32>
    %27 = vector.broadcast %26 : vector<8x8x1xi32> to vector<8x8x256xi32>
    %28 = arith.cmpi eq, %2, %27 : vector<8x8x256xi32>
    %29 = arith.ori %22, %28 : vector<8x8x256xi1>
    %30 = vector.extract_strided_slice %0 {offsets = [0, 4], sizes = [8, 8], strides = [1, 1]} : vector<8x12xi32> to vector<8x8xi32>
    %c120_i32 = arith.constant 120 : i32
    %31 = vector.broadcast %c120_i32 : i32 to vector<8x8xi32>
    %32 = arith.addi %30, %31 : vector<8x8xi32>
    %33 = vector.shape_cast %32 : vector<8x8xi32> to vector<8x8x1xi32>
    %34 = vector.broadcast %33 : vector<8x8x1xi32> to vector<8x8x256xi32>
    %35 = arith.cmpi eq, %2, %34 : vector<8x8x256xi32>
    %36 = arith.ori %29, %35 : vector<8x8x256xi1>
    %37 = arith.extui %36 : vector<8x8x256xi1> to vector<8x8x256xi32>
    %38 = arith.sitofp %37 : vector<8x8x256xi32> to vector<8x8x256xf32>
    %39 = arith.truncf %38 : vector<8x8x256xf32> to vector<8x8x256xbf16>
    %40 = vector.shape_cast %39 : vector<8x8x256xbf16> to vector<64x256xbf16>
    %cst = arith.constant dense<0.000000e+00> : vector<64x128xf32>
    %41 = tpu.matmul %40, %1, %cst {dimension_numbers = #tpu.dot_dimension_numbers<[1], [0], [0], [1], [0, 0, 1, 1], [], []>} : vector<64x256xbf16>, vector<256x128xbf16>, vector<64x128xf32> -> vector<64x128xf32>
    %42 = vector.shape_cast %41 : vector<64x128xf32> to vector<8x8x128xf32>
    %cst_3 = arith.constant dense<0xFF800000> : vector<8x128xf32>
    %43 = vector.multi_reduction <maximumf>, %42, %cst_3 [1] : vector<8x8x128xf32> to vector<8x128xf32>
    %c0_4 = arith.constant 0 : index
    %c0_5 = arith.constant 0 : index
    %44 = vector.load %arg3[%c0_4, %c0_5] : memref<1x128xf32, #tpu.memory_space<vmem>>, vector<1x128xf32>
    %45 = vector.broadcast %44 : vector<1x128xf32> to vector<8x128xf32>
    %46 = arith.addf %43, %45 : vector<8x128xf32>
    %cst_6 = arith.constant 0.000000e+00 : f32
    %47 = vector.broadcast %cst_6 : f32 to vector<8x128xf32>
    %48 = arith.maximumf %46, %47 : vector<8x128xf32>
    %49 = arith.truncf %48 : vector<8x128xf32> to vector<8x128xbf16>
    %c0_7 = arith.constant 0 : index
    %c0_8 = arith.constant 0 : index
    %50 = vector.load %arg4[%c0_7, %c0_8] : memref<128x256xbf16, #tpu.memory_space<vmem>>, vector<128x256xbf16>
    %cst_9 = arith.constant dense<0.000000e+00> : vector<8x256xf32>
    %51 = tpu.matmul %49, %50, %cst_9 {dimension_numbers = #tpu.dot_dimension_numbers<[1], [0], [0], [1], [0, 0, 1, 1], [], []>} : vector<8x128xbf16>, vector<128x256xbf16>, vector<8x256xf32> -> vector<8x256xf32>
    %c0_10 = arith.constant 0 : index
    %c0_11 = arith.constant 0 : index
    %52 = vector.load %arg5[%c0_10, %c0_11] : memref<1x256xf32, #tpu.memory_space<vmem>>, vector<1x256xf32>
    %53 = vector.broadcast %52 : vector<1x256xf32> to vector<8x256xf32>
    %54 = arith.addf %51, %53 : vector<8x256xf32>
    %55 = vector.extract_strided_slice %54 {offsets = [0, 0], sizes = [8, 128], strides = [1, 1]} : vector<8x256xf32> to vector<8x128xf32>
    %cst_12 = arith.constant 0.000000e+00 : f32
    %56 = vector.broadcast %cst_12 : f32 to vector<8x128xf32>
    %57 = arith.maximumf %55, %56 : vector<8x128xf32>
    %58 = vector.extract_strided_slice %54 {offsets = [0, 128], sizes = [8, 128], strides = [1, 1]} : vector<8x256xf32> to vector<8x128xf32>
    %59 = arith.negf %58 : vector<8x128xf32>
    %60 = math.exp %59 : vector<8x128xf32>
    %cst_13 = arith.constant 1.000000e+00 : f32
    %61 = vector.broadcast %cst_13 : f32 to vector<8x128xf32>
    %62 = arith.addf %61, %60 : vector<8x128xf32>
    %63 = arith.divf %61, %62 : vector<8x128xf32>
    %64 = arith.subf %57, %48 : vector<8x128xf32>
    %65 = arith.mulf %63, %64 : vector<8x128xf32>
    %66 = arith.addf %48, %65 : vector<8x128xf32>
    %c0_14 = arith.constant 0 : index
    %c0_15 = arith.constant 0 : index
    %67 = vector.load %arg6[%c0_14, %c0_15] : memref<8x128xf32, #tpu.memory_space<vmem>>, vector<8x128xf32>
    tpu.vector_store %arg6[%c0_14, %c0_15], %66 {strides = array<i32>} : memref<8x128xf32, #tpu.memory_space<vmem>>, vector<8x128xf32>,
    return
  }
  func.func @transform_0(%arg0: i32) -> (i32, i32) {
    %c0_i32 = arith.constant 0 : i32
    %c0_i32_0 = arith.constant 0 : i32
    return %arg0, %c0_i32 : i32, i32
  }
  func.func @transform_1(%arg0: i32) -> (i32, i32) {
    %c0_i32 = arith.constant 0 : i32
    %c0_i32_0 = arith.constant 0 : i32
    %c0_i32_1 = arith.constant 0 : i32
    return %c0_i32, %c0_i32_0 : i32, i32
  }
  func.func @transform_2(%arg0: i32) -> (i32, i32) {
    %c0_i32 = arith.constant 0 : i32
    %c0_i32_0 = arith.constant 0 : i32
    %c0_i32_1 = arith.constant 0 : i32
    return %c0_i32, %c0_i32_0 : i32, i32
  }
  func.func @transform_3(%arg0: i32) -> (i32, i32) {
    %c0_i32 = arith.constant 0 : i32
    %c0_i32_0 = arith.constant 0 : i32
    %c0_i32_1 = arith.constant 0 : i32
    return %c0_i32, %c0_i32_0 : i32, i32
  }
  func.func @transform_4(%arg0: i32) -> (i32, i32) {
    %c0_i32 = arith.constant 0 : i32
    %c0_i32_0 = arith.constant 0 : i32
    %c0_i32_1 = arith.constant 0 : i32
    return %c0_i32, %c0_i32_0 : i32, i32
  }
  func.func @transform_5(%arg0: i32) -> (i32, i32) {
    %c0_i32 = arith.constant 0 : i32
    %c0_i32_0 = arith.constant 0 : i32
    return %arg0, %c0_i32 : i32, i32
  }
}

</mosaic_0001>

<bundles_post_ra>
// kernel: tpu_custom_call.1
= control target key start
LH: loop header
LB: loop body
LE: loop exit
PB: predicated region body
PF: predicated region fallthrough
CT: control target
= control target key end

     0   :  { %10 = vsyncpa [#allocation3], 0  ;;  %s2335_s0 = inlined_call_operand.hbm [shape: s32[16,12], index: 0, kind: input, shape index: {}]   ;;  %s2336_s1 = inlined_call_operand.hbm [shape: bf16[256,128], index: 1, kind: input, shape index: {}]   ;;  %s2337_s2 = inlined_call_operand.vmem [shape: f32[1,128], index: 2, kind: input, shape index: {}]   ;;  %s2338_s3 = inlined_call_operand.hbm [shape: bf16[128,256], index: 3, kind: input, shape index: {}]   ;;  %s2339_s4 = inlined_call_operand.vmem [shape: f32[1,256], index: 4, kind: input, shape index: {}]   ;;  %s2340_s5 = inlined_call_operand.hbm [shape: f32[16,128], index: 5, kind: output, shape index: {}]  }
   0x1   :  { %12 = vsyncpa [#allocation3 + $0x1], 0 }
   0x2   :  { %13 = vsyncpa [#allocation6], 0 }
   0x3   :  { %14 = vsyncpa [#allocation4], 0 }
   0x4   :  { %16 = vsyncpa [#allocation4 + $0x1], 0  ;;  %s1902_s18 = smov 0   ;;  %s1904_s19 = smov 0  }
   0x5   :  { %s1906_s20 = smov 0   ;;  %s1908_s21 = smov 0  }
   0x6 LB: > { %s1923_s22 = sadd.s32 4294967295, %s1860_s21   ;;  %s1473_s23 = sadd.s32 4294967294, %s1860_s21   ;;  %s1860_s21 = sphi %s1908_s21, %s2362_s21   ;;  %s1856_s20 = sphi %s1906_s20, %s2361_s20   ;;  %s1852_s19 = sphi %s1904_s19, %s2360_s19   ;;  %s1848_s18 = sphi %s1902_s18, %s2359_s18  }
   0x7   : > { %p42_p0 = scmp.ne.s32.totalorder %s1852_s19, %s1848_s18  ;;  %p2341_p1 = scmp.eq.s32.totalorder %s1923_s22, 0 }
   0x8   : > { %p156_p3 = scmp.eq.s32.totalorder %s1473_s23, 1  ;;  %p1474_p5 = scmp.ge.s32.totalorder %s1860_s21, 1 }
   0x9   : > { %p1932_p4 = por %p2341_p1, %p42_p0  ;;  %p163_p7 = scmp.lt.s32.totalorder %s1860_s21, 3 }
   0xa   : > { %p1937_p6 = por %p156_p3, %p42_p0  ;;  %s1862_s27 = smov [#allocation5]  }
   0xb   : > { %s2345_s24 = scalar_select %p1932_p4, 1, 0 }
   0xc   : > { %s2346_s25 = scalar_select %p1937_p6, 1, 0 }
   0xd   : > { %p1942_p8 = pnand %p1474_p5, %p163_p7  ;;  %s175_s28 = sshll.u32 %s1862_s27, 4  ;;  %s176_s28 = int_to_ptr.vmem [resolvable:$true] %s175_s28 }
   0xe   : > { %s1863_s30 = smov [#allocation7]   ;;  %s1723_s7 = scalar_lea.vmem %s176_s28, 2048 }
   0xf   : > { %s2347_s26 = scalar_select %p1942_p8, 1, 0 }
  0x10   : > { %p1607_p9 = pneg %p1942_p8  ;;  %s191_s6 = sshll.u32 %s1863_s30, 4  ;;  %s192_s6 = int_to_ptr.vmem [resolvable:$true] %s191_s6 }
  0x11   : > { %p1724_p13 = scmp.ne.s32.totalorder %s176_s28, %s1723_s7  ;;  %p1731_p5 = scmp.lt.s32.totalorder %s176_s28, %s176_s28 }
  0x12   : > { %p1951_p11 = pnand %p1607_p9, %p2341_p1  ;;  %p1732_p7 = scmp.lt.s32.totalorder %s1723_s7, %s1723_s7 }
  0x14   : > { %p1714_p12 = pneg %p1951_p11  ;;  %p1733_p10 = por %p1732_p7, %p1731_p5 }
  0x16   : > { %p1726_p0 = pnand %p1724_p13, %p1714_p12 }
  0x18   : > { %p1727_p3 = pneg %p1726_p0 }
  0x1a   : > { %p1734_p9 = pnand %p1733_p10, %p1727_p3 }
  0x1c   : > { %1737 = shalt.err (!%p1734_p9)
}
  0x1d   : > { %s1864_s8 = smov 64   ;;  %s1865_s9 = smov 4  }
  0x1e   : > { %1610 = dma.hbm_to_vmem [thread:$0]  (!%p1951_p11), %s2336_s1, 2048, %s176_s28, [#allocation6], %s1864_s8, %s1864_s8, %s1865_s9  }
  0x1f   : > { %s1749_s12 = scalar_lea.vmem %s192_s6, 2048  ;;  %p1757_p2 = scmp.lt.s32.totalorder %s192_s6, %s192_s6 }
  0x20   : > { %p1750_p1 = scmp.ne.s32.totalorder %s192_s6, %s1749_s12  ;;  %p1758_p6 = scmp.lt.s32.totalorder %s1749_s12, %s1749_s12 }
  0x22   : > { %p1752_p13 = pnand %p1750_p1, %p1714_p12  ;;  %p1759_p5 = por %p1758_p6, %p1757_p2 }
  0x24   : > { %p1753_p0 = pneg %p1752_p13 }
  0x26   : > { %p1760_p10 = pnand %p1759_p5, %p1753_p0 }
  0x28   : > { %1763 = shalt.err (!%p1760_p10)
}
  0x29   : > { %s1866_s13 = smov 128   ;;  %s1867_s14 = smov 8  }
  0x2a   : > { %1613 = dma.hbm_to_vmem [thread:$0]  (!%p1951_p11), %s2338_s3, 2048, %s192_s6, [#allocation6], %s1866_s13, %s1866_s13, %s1867_s14  }
  0x2b   : > { %s1974_s17 = sadd.s32 1, %s1860_s21   ;;  %s29_s27 = sadd.s32 1, %s1856_s20 }
  0x2c   : > { %s26_s23 = ssub.s32 %s1860_s21, %s1974_s17  ;;  %p36_p2 = scmp.ne.s32.totalorder %s1856_s20, %s1852_s19 }
  0x2d   : > { %p27_p1 = scmp.eq.s32.totalorder %s26_s23, 0  ;;  %p37_p6 = scmp.eq.s32.totalorder %s1860_s21, 0 }
  0x2e   : > { %p2349_p3 = scmp.eq.s32.totalorder %s1923_s22, 1  ;;  %p1624_p9 = scmp.lt.s32.totalorder %s1860_s21, 2 }
  0x2f   : > { %s1983_s28 = scalar_select %p27_p1, %s1856_s20, %s29_s27  }
  0x30   : > { %p38_p12 = por %p37_p6, %p36_p2  ;;  %p1987_p7 = por %p2349_p3, %p36_p2 }
  0x31   : > { %s208_s29 = sand.u32 1, %s1856_s20   ;;  %s1479_s6 = sshll.u32 %s1860_s21, 7 }
  0x32   : > { %s2350_s30 = scalar_select %p1987_p7, 1, 0 }
  0x33   : > { %s1478_s7 = sshll.u32 %s208_s29, 3  ;;  %s1997_s10 = scalar_lea.hbm %s2335_s0, %s1479_s6 }
  0x34   : > { %s212_s11 = scalar_lea.vmem [#allocation2], %s1478_s7  ;;  %p1999_p11 = pnand %p1624_p9, %p38_p12 }
  0x35   : > { %s219_s12 = sshll.u32 %s212_s11, 4  ;;  %s209_s14 = scalar_lea.sflag [#allocation3], %s208_s29  ;;  %s220_s12 = int_to_ptr.vmem [resolvable:$true] %s219_s12 }
  0x36   : > { %s1764_s15 = scalar_lea.hbm %s1997_s10, 128  ;;  %p1766_p0 = pneg %p1999_p11 }
  0x37   : > { %p1765_p13 = scmp.ne.s32.totalorder %s1997_s10, %s1764_s15  ;;  %s1769_s27 = scalar_lea.hbm %s2335_s0, 256 }
  0x38   : > { %p1770_p1 = scmp.lt.s32.totalorder %s1997_s10, %s2335_s0  ;;  %p1771_p2 = scmp.lt.s32.totalorder %s1769_s27, %s1764_s15 }
  0x39   : > { %p1767_p5 = pnand %p1766_p0, %p1765_p13 }
  0x3a   : > { %p1772_p6 = por %p1771_p2, %p1770_p1 }
  0x3b   : > { %p1768_p10 = pneg %p1767_p5 }
  0x3d   : > { %p1773_p12 = pnand %p1772_p6, %p1768_p10 }
  0x3f   : > { %1776 = shalt.err (!%p1773_p12)
}
  0x40   : > { %s1777_s8 = scalar_lea.vmem %s220_s12, 128  ;;  %s1868_s29 = smov [#allocation2]  }
  0x41   : > { %p1778_p3 = scmp.ne.s32.totalorder %s220_s12, %s1777_s8  ;;  %s1782_s9 = sshll.u32 %s1868_s29, 4  ;;  %s1783_s9 = int_to_ptr.vmem [resolvable:$false] %s1782_s9 }
  0x42   : > { %s1784_s11 = scalar_lea.vmem %s1783_s9, 256  ;;  %p1785_p13 = scmp.lt.s32.totalorder %s220_s12, %s1783_s9 }
  0x43   : > { %p1780_p9 = pnand %p1778_p3, %p1766_p0  ;;  %p1786_p5 = scmp.lt.s32.totalorder %s1784_s11, %s1777_s8 }
  0x45   : > { %p1781_p7 = pneg %p1780_p9  ;;  %p1787_p4 = por %p1786_p5, %p1785_p13 }
  0x47   : > { %p1788_p8 = pnand %p1787_p4, %p1781_p7 }
  0x49   : > { %1791 = shalt.err (!%p1788_p8)
}
  0x4a   : > { %1617 = dma.hbm_to_vmem [thread:$0]  (!%p1999_p11), %s1997_s10, 128, %s220_s12, %s209_s14  }
  0x4b   : > { %p2352_p10 = scmp.ne.s32.totalorder %s2347_s26, 0 }
  0x4c   : > { %s2020_s15 = sand.u32 (!%p2352_p10), 1, %s1852_s19   ;;  %p2353_p4 = scmp.ne.s32.totalorder (!%p2352_p10), %s2345_s24, 0 }
  0x4d   : > { %228 = sbr.rel (%p2352_p10) target bundleno = 777 (0x309), region = 40  ;;  %s1481_s16 = sshll.u32 (!%p2352_p10), %s2020_s15, 3 }
  0x4e   : > { %s231_s23 = scalar_lea.sflag (!%p2352_p10), [#allocation3], %s2020_s15  ;;  %s234_s27 = scalar_lea.vmem (!%p2352_p10), [#allocation2], %s1481_s16 }
  0x52   : > { %1835 = dma.done.wait (%p2353_p4), %s231_s23, 128  }
  0x53   : > { %1837 = vsyncadd (%p2353_p4), %s231_s23, 4294967168  ;;  %p2354_p8 = scmp.eq.s32.totalorder %s1923_s22, 0 }
  0x55   : > { %1839 = dma.done.wait (%p2354_p8), [#allocation6], 4096   ;;  %p2355_p7 = pmov %p2354_p8 }
  0x56   : > { %v303_v0 = vlaneseq  ;;  %v2043_v4 = vld [vmem:[%s234_s27] sm:$0xff]  ;;  %v1672_v17 = vld [vmem:[#allocation5 + $0x68] sm:$0xff]   ;;  %v1674_v22 = vld [vmem:[#allocation5 + $0x60] sm:$0xff]   ;;  %s1544_s13 = sshll.u32 %s1923_s22, 7  ;;  %s268_s14 = scalar_lea.vmem [#allocation8], %s1481_s16 }
  0x57   : > { %1841 = vsyncadd (%p2355_p7), [#allocation6], 4294963200  ;;  %v2048_v6 = vadd.s32 30, %v2043_v4  ;;  %v1668_v7 = vld [vmem:[#allocation5 + $0x78] sm:$0xff]   ;;  %v2055_v11 = vadd.s32 60, %v2043_v4  ;;  %v1670_v12 = vld [vmem:[#allocation5 + $0x70] sm:$0xff]   ;;  %s2297_s29 = scalar_lea.hbm %s2340_s5, %s1544_s13 }
  0x58   : > { %v2035_v1 = vshrl.u32 %v303_v0, 7  ;;  %v1669_v8 = vld [vmem:[#allocation5 + $0x38] sm:$0xff]   ;;  %1555 = vmatprep.subr.bf16.mxu0 %v1668_v7  ;;  %v1671_v14 = vld [vmem:[#allocation5 + $0x30] sm:$0xff]   ;;  %v2062_v16 = vadd.s32 90, %v2043_v4  ;;  %v2067_v19 = vadd.s32 120, %v2043_v4  ;;  %v1673_v20 = vld [vmem:[#allocation5 + $0x28] sm:$0xff]  }
  0x59   : > { %1556 = vmatpush3.bf16.msra.mxu0 %v1669_v8  ;;  %v1675_v25 = vld [vmem:[#allocation5 + $0x20] sm:$0xff]   ;;  %v1676_v27 = vld [vmem:[#allocation5 + $0x58] sm:$0xff]   ;;  %v1678_v31 = vld [vmem:[#allocation5 + $0x50] sm:$0xff]   ;;  %s1384_s6 = sshll.u32 %s268_s14, 4  ;;  %s1371_s22 = scalar_lea.sflag [#allocation4], %s2020_s15  ;;  %s1385_s6 = int_to_ptr.vmem [resolvable:$true] %s1384_s6 }
  0x5a   : > { %v2038_v2 = vsub.s32 0, %v2035_v1  ;;  %v2041_v3 = vsub.s32 1, %v2035_v1  ;;  %1557 = vmatprep.subr.bf16.mxu0 %v1670_v12  ;;  %v322_v24 = vsub.s32 2, %v2035_v1  ;;  %v1677_v28 = vld [vmem:[#allocation5 + $0x18] sm:$0xff]   ;;  %v329_v30 = vsub.s32 3, %v2035_v1  ;;  %v1679_v34 = vld [vmem:[#allocation5 + $0x10] sm:$0xff]  }
  0x5b   : > { %v1680_v36 = vld [vmem:[#allocation5 + $0x48] sm:$0xff]   ;;  %v1682_v40 = vld [vmem:[#allocation5 + $0x40] sm:$0xff]   ;;  %v336_v46 = vsub.s32 4, %v2035_v1  ;;  %v343_v48 = vsub.s32 5, %v2035_v1  ;;  %v350_v58 = vsub.s32 6, %v2035_v1  ;;  %v357_v60 = vsub.s32 7, %v2035_v1 }
  0x5c   : > { %v309_v5 = vrot.slane %v2043_v4, %v2038_v2  ;;  %v382_v9 = vrot.slane %v2048_v6, %v2038_v2  ;;  %v316_v10 = vrot.slane %v2043_v4, %v2041_v3  ;;  %v390_v13 = vrot.slane %v2048_v6, %v2041_v3  ;;  %v1681_v38 = vld [vmem:[#allocation5 + $0x8] sm:$0xff]   ;;  %v1683_v42 = vld [vmem:[#allocation5] sm:$0xff]   ;;  %s1792_s9 = scalar_lea.vmem %s1385_s6, 128  ;;  %p2356_p0 = scmp.ne.s32.totalorder %s2350_s30, 0 }
  0x5d   : > { %v479_v15 = vrot.slane %v2055_v11, %v2038_v2  ;;  %v487_v18 = vrot.slane %v2055_v11, %v2041_v3  ;;  %1558 = vmatpush3.bf16.msra.mxu0 %v1671_v14  ;;  %v576_v21 = vrot.slane %v2062_v16, %v2038_v2  ;;  %v584_v23 = vrot.slane %v2062_v16, %v2041_v3  ;;  %p1793_p11 = scmp.ne.s32.totalorder %s1385_s6, %s1792_s9  ;;  %s1871_s11 = smov [#allocation8]  }
  0x5e   : > { %311 = vbcast.lane.b32.xlu0 %v309_v5, 256  ;;  %385 = vbcast.lane.b32.xlu1 %v382_v9, 257  ;;  %v673_v26 = vrot.slane %v2067_v19, %v2038_v2  ;;  %v681_v29 = vrot.slane %v2067_v19, %v2041_v3  ;;  %v323_v32 = vrot.slane %v2043_v4, %v322_v24  ;;  %s1796_s16 = sshll.u32 %s1871_s11, 4  ;;  %s1797_s16 = int_to_ptr.vmem [resolvable:$false] %s1796_s16 }
  0x5f   : > { %1559 = vmatprep.subr.bf16.mxu0 %v1672_v17  ;;  %v330_v33 = vrot.slane %v2043_v4, %v329_v30  ;;  %v398_v35 = vrot.slane %v2048_v6, %v322_v24  ;;  %v406_v37 = vrot.slane %v2048_v6, %v329_v30  ;;  %v495_v39 = vrot.slane %v2055_v11, %v322_v24  ;;  %p1794_p1 = pnand %p1793_p11, %p2356_p0  ;;  %s1798_s23 = scalar_lea.vmem %s1797_s16, 256 }
  0x60   : > { %v503_v41 = vrot.slane %v2055_v11, %v329_v30  ;;  %v592_v43 = vrot.slane %v2062_v16, %v322_v24  ;;  %v600_v44 = vrot.slane %v2062_v16, %v329_v30  ;;  %v689_v45 = vrot.slane %v2067_v19, %v322_v24  ;;  %p1799_p6 = scmp.lt.s32.totalorder %s1385_s6, %s1797_s16  ;;  %p1800_p12 = scmp.lt.s32.totalorder %s1798_s23, %s1792_s9 }
  0x61   : > { %1560 = vmatpush3.bf16.msra.mxu0 %v1673_v20  ;;  %v697_v47 = vrot.slane %v2067_v19, %v329_v30  ;;  %v337_v49 = vrot.slane %v2043_v4, %v336_v46  ;;  %v344_v50 = vrot.slane %v2043_v4, %v343_v48  ;;  %v414_v51 = vrot.slane %v2048_v6, %v336_v46  ;;  %p1795_p2 = pneg %p1794_p1 }
  0x62   : > { %318 = vbcast.lane.b32.xlu0 %v316_v10, 256  ;;  %393 = vbcast.lane.b32.xlu1 %v390_v13, 257  ;;  %v422_v52 = vrot.slane %v2048_v6, %v343_v48  ;;  %v511_v53 = vrot.slane %v2055_v11, %v336_v46  ;;  %v519_v54 = vrot.slane %v2055_v11, %v343_v48  ;;  %p1801_p3 = por %p1800_p12, %p1799_p6 }
  0x63   : > { %1561 = vmatprep.subr.bf16.mxu0 %v1674_v22  ;;  %v608_v55 = vrot.slane %v2062_v16, %v336_v46  ;;  %v616_v56 = vrot.slane %v2062_v16, %v343_v48  ;;  %v705_v57 = vrot.slane %v2067_v19, %v336_v46  ;;  %v713_v59 = vrot.slane %v2067_v19, %v343_v48 }
  0x64   : > { %v351_v61 = vrot.slane %v2043_v4, %v350_v58  ;;  %v358_v62 = vrot.slane %v2043_v4, %v357_v60  ;;  %v430_v63 = vrot.slane %v2048_v6, %v350_v58  ;;  %v438_v5 = vrot.slane %v2048_v6, %v357_v60  ;;  %p1802_p9 = pnand %p1801_p3, %p1795_p2 }
  0x65   : > { %1562 = vmatpush3.bf16.msra.mxu0 %v1675_v25  ;;  %v527_v7 = vrot.slane %v2055_v11, %v350_v58  ;;  %v535_v8 = vrot.slane %v2055_v11, %v357_v60  ;;  %v624_v1 = vrot.slane %v2062_v16, %v350_v58  ;;  %v632_v9 = vrot.slane %v2062_v16, %v357_v60 }
  0x66   : > { %482 = vbcast.lane.b32.xlu0 %v479_v15, 258  ;;  %490 = vbcast.lane.b32.xlu1 %v487_v18, 258  ;;  %v721_v4 = vrot.slane %v2067_v19, %v350_v58  ;;  %v729_v10 = vrot.slane %v2067_v19, %v357_v60  ;;  %v2114_v6 = vand.u32 127, %v303_v0  ;;  %v1869_v22 = vmov 0.0  }
  0x67   : > { %1563 = vmatprep.subr.bf16.mxu0 %v1676_v27 }
  0x68   : > { %v2117_v12 = vadd.s32 128, %v2114_v6 }
  0x69   : > { %1564 = vmatpush3.bf16.msra.mxu0 %v1677_v28 }
  0x6a   : > { %579 = vbcast.lane.b32.xlu0 %v576_v21, 259  ;;  %587 = vbcast.lane.b32.xlu1 %v584_v23, 259 }
  0x6b   : > { %1565 = vmatprep.subr.bf16.mxu0 %v1678_v31 }
  0x6d   : > { %1566 = vmatpush3.bf16.msra.mxu0 %v1679_v34 }
  0x6e   : > { %676 = vbcast.lane.b32.xlu0 %v673_v26, 260  ;;  %684 = vbcast.lane.b32.xlu1 %v681_v29, 260 }
  0x6f   : > { %1567 = vmatprep.subr.bf16.mxu0 %v1680_v36 }
  0x71   : > { %1568 = vmatpush3.bf16.msra.mxu0 %v1681_v38 }
  0x72   : > { %325 = vbcast.lane.b32.xlu0 %v323_v32, 256  ;;  %332 = vbcast.lane.b32.xlu1 %v330_v33, 256 }
  0x73   : > { %1569 = vmatprep.subr.bf16.mxu0 %v1682_v40 }
  0x75   : > { %1570 = vmatpush3.bf16.msra.mxu0 %v1683_v42 }
  0x76   : > { %401 = vbcast.lane.b32.xlu0 %v398_v35, 257  ;;  %409 = vbcast.lane.b32.xlu1 %v406_v37, 257 }
  0x7a   : > { %498 = vbcast.lane.b32.xlu0 %v495_v39, 258  ;;  %506 = vbcast.lane.b32.xlu1 %v503_v41, 258 }
  0x7e   : > { %595 = vbcast.lane.b32.xlu0 %v592_v43, 259  ;;  %603 = vbcast.lane.b32.xlu1 %v600_v44, 259 }
  0x82   : > { %692 = vbcast.lane.b32.xlu0 %v689_v45, 260  ;;  %700 = vbcast.lane.b32.xlu1 %v697_v47, 260 }
  0x86   : > { %339 = vbcast.lane.b32.xlu0 %v337_v49, 256  ;;  %346 = vbcast.lane.b32.xlu1 %v344_v50, 256 }
  0x8a   : > { %417 = vbcast.lane.b32.xlu0 %v414_v51, 257  ;;  %425 = vbcast.lane.b32.xlu1 %v422_v52, 257 }
  0x8e   : > { %514 = vbcast.lane.b32.xlu0 %v511_v53, 258  ;;  %522 = vbcast.lane.b32.xlu1 %v519_v54, 258 }
  0x92   : > { %611 = vbcast.lane.b32.xlu0 %v608_v55, 259  ;;  %619 = vbcast.lane.b32.xlu1 %v616_v56, 259 }
  0x96   : > { %708 = vbcast.lane.b32.xlu0 %v705_v57, 260  ;;  %716 = vbcast.lane.b32.xlu1 %v713_v59, 260 }
  0x9a   : > { %353 = vbcast.lane.b32.xlu0 %v351_v61, 256  ;;  %360 = vbcast.lane.b32.xlu1 %v358_v62, 256 }
  0x9e   : > { %433 = vbcast.lane.b32.xlu0 %v430_v63, 257  ;;  %441 = vbcast.lane.b32.xlu1 %v438_v5, 257 }
  0xa2   : > { %530 = vbcast.lane.b32.xlu0 %v527_v7, 258  ;;  %538 = vbcast.lane.b32.xlu1 %v535_v8, 258 }
  0xa6   : > { %627 = vbcast.lane.b32.xlu0 %v624_v1, 259  ;;  %635 = vbcast.lane.b32.xlu1 %v632_v9, 259 }
  0xaa   : > { %724 = vbcast.lane.b32.xlu0 %v721_v4, 260  ;;  %732 = vbcast.lane.b32.xlu1 %v729_v10, 260 }
  0xd0   : > { %v312_v11 = vpop.permute.xlu0 %311  ;;  %v386_v13 = vpop.permute.xlu1 %385 }
  0xd1   : > { %vm362_vm0 = vcmp.eq.s32.totalorder %v2114_v6, %v312_v11  ;;  %vm443_vm1 = vcmp.eq.s32.totalorder %v2114_v6, %v386_v13  ;;  %vm363_vm2 = vcmp.eq.s32.totalorder %v2117_v12, %v312_v11  ;;  %vm444_vm3 = vcmp.eq.s32.totalorder %v2117_v12, %v386_v13 }
  0xd2   : > { %vm459_vm5 = vmor %vm362_vm0, %vm443_vm1 }
  0xd3   : > { %vm460_vm7 = vmor %vm363_vm2, %vm444_vm3 }
  0xd4   : > { %v319_v14 = vpop.permute.xlu0 %318  ;;  %v394_v0 = vpop.permute.xlu1 %393 }
  0xd5   : > { %vm364_vm4 = vcmp.eq.s32.totalorder %v2114_v6, %v319_v14  ;;  %vm365_vm6 = vcmp.eq.s32.totalorder %v2117_v12, %v319_v14  ;;  %vm445_vm8 = vcmp.eq.s32.totalorder %v2114_v6, %v394_v0  ;;  %vm446_vm9 = vcmp.eq.s32.totalorder %v2117_v12, %v394_v0 }
  0xd6   : > { %vm461_vm10 = vmor %vm364_vm4, %vm445_vm8 }
  0xd7   : > { %vm462_vm11 = vmor %vm365_vm6, %vm446_vm9 }
  0xd8   : > { %v483_v15 = vpop.permute.xlu0 %482  ;;  %v491_v16 = vpop.permute.xlu1 %490 }
  0xd9   : > { %vm540_vm12 = vcmp.eq.s32.totalorder %v2114_v6, %v483_v15  ;;  %vm541_vm13 = vcmp.eq.s32.totalorder %v2117_v12, %v483_v15  ;;  %vm542_vm0 = vcmp.eq.s32.totalorder %v2114_v6, %v491_v16  ;;  %vm543_vm1 = vcmp.eq.s32.totalorder %v2117_v12, %v491_v16  ;;  %v1684_v16 = vld [vmem:[#allocation7 + $0x74] ss:$8 sps:$4 sm:$0xff]  }
  0xda   : > { %vm556_vm14 = vmor %vm459_vm5, %vm540_vm12  ;;  %1249 = vmatprep.subr.bf16.mxu1 %v1684_v16 }
  0xdb   : > { %vm557_vm15 = vmor %vm460_vm7, %vm541_vm13 }
  0xdc   : > { %vm558_vm2 = vmor %vm461_vm10, %vm542_vm0  ;;  %v580_v17 = vpop.permute.xlu0 %579  ;;  %v588_v18 = vpop.permute.xlu1 %587 }
  0xdd   : > { %vm559_vm3 = vmor %vm462_vm11, %vm543_vm1  ;;  %vm637_vm4 = vcmp.eq.s32.totalorder %v2114_v6, %v580_v17  ;;  %vm638_vm8 = vcmp.eq.s32.totalorder %v2117_v12, %v580_v17  ;;  %vm639_vm5 = vcmp.eq.s32.totalorder %v2114_v6, %v588_v18  ;;  %vm640_vm12 = vcmp.eq.s32.totalorder %v2117_v12, %v588_v18  ;;  %v1686_v17 = vld [vmem:[#allocation7 + $0x70] ss:$8 sps:$4 sm:$0xff]   ;;  %v1690_v18 = vld [vmem:[#allocation7 + $0x54] ss:$8 sps:$4 sm:$0xff]  }
  0xde   : > { %vm653_vm6 = vmor %vm556_vm14, %vm637_vm4  ;;  %1250 = vmatpush1.bf16.msra.mxu1 %v1686_v17 }
  0xdf   : > { %vm654_vm9 = vmor %vm557_vm15, %vm638_vm8 }
  0xe0   : > { %vm655_vm7 = vmor %vm558_vm2, %vm639_vm5  ;;  %v677_v19 = vpop.permute.xlu0 %676  ;;  %v685_v20 = vpop.permute.xlu1 %684 }
  0xe1   : > { %vm656_vm13 = vmor %vm559_vm3, %vm640_vm12  ;;  %vm734_vm0 = vcmp.eq.s32.totalorder %v2114_v6, %v677_v19  ;;  %vm735_vm10 = vcmp.eq.s32.totalorder %v2117_v12, %v677_v19  ;;  %vm736_vm11 = vcmp.eq.s32.totalorder %v2114_v6, %v685_v20  ;;  %vm737_vm4 = vcmp.eq.s32.totalorder %v2117_v12, %v685_v20  ;;  %v1692_v19 = vld [vmem:[#allocation7 + $0x50] ss:$8 sps:$4 sm:$0xff]   ;;  %v1693_v20 = vld [vmem:[#allocation7 + $0x44] ss:$8 sps:$4 sm:$0xff]  }
  0xe2   : > { %vm750_vm1 = vmor %vm653_vm6, %vm734_vm0 }
  0xe3   : > { %vm751_vm14 = vmor %vm654_vm9, %vm735_vm10  ;;  %v1485_v23 = vsel %vm750_vm1, 1.0, %v1869_v22 }
  0xe4   : > { %vm752_vm8 = vmor %vm655_vm7, %vm736_vm11  ;;  %v326_v21 = vpop.permute.xlu0 %325  ;;  %v333_v25 = vpop.permute.xlu1 %332  ;;  %v1486_v26 = vsel %vm751_vm14, 1.0, %v1869_v22 }
  0xe5   : > { %v1487_v24 = vsel %vm752_vm8, 1.0, %v1869_v22  ;;  %vm753_vm15 = vmor %vm656_vm13, %vm737_vm4  ;;  %vm366_vm2 = vcmp.eq.s32.totalorder %v2114_v6, %v326_v21  ;;  %vm367_vm9 = vcmp.eq.s32.totalorder %v2117_v12, %v326_v21  ;;  %vm368_vm12 = vcmp.eq.s32.totalorder %v2114_v6, %v333_v25  ;;  %v1695_v21 = vld [vmem:[#allocation7 + $0x40] ss:$8 sps:$4 sm:$0xff]  }
  0xe6   : > { %v1488_v27 = vsel %vm753_vm15, 1.0, %v1869_v22  ;;  %v1547_v28 = vpack.c.bf16 %v1487_v24, %v1485_v23  ;;  %vm369_vm10 = vcmp.eq.s32.totalorder %v2117_v12, %v333_v25  ;;  %v1698_v23 = vld [vmem:[#allocation7 + $0x30] ss:$8 sps:$4 sm:$0xff]   ;;  %v1699_v24 = vld [vmem:[#allocation7 + $0x24] ss:$8 sps:$4 sm:$0xff]  }
  0xe7   : > { %v1548_v29 = vpack.c.bf16 %v1488_v27, %v1486_v26  ;;  %v1701_v25 = vld [vmem:[#allocation7 + $0x20] ss:$8 sps:$4 sm:$0xff]   ;;  %v1702_v26 = vld [vmem:[#allocation7 + $0x14] ss:$8 sps:$4 sm:$0xff]   ;;  %v1704_v27 = vld [vmem:[#allocation7 + $0x10] ss:$8 sps:$4 sm:$0xff]  }
  0xe8   : > { %v402_v30 = vpop.permute.xlu0 %401  ;;  %v410_v31 = vpop.permute.xlu1 %409 }
  0xe9   : > { %990 = vmatprep.mubr.bf16.mxu0 %v1548_v29  ;;  %vm447_vm3 = vcmp.eq.s32.totalorder %v2114_v6, %v402_v30  ;;  %vm448_vm6 = vcmp.eq.s32.totalorder %v2117_v12, %v402_v30  ;;  %vm449_vm13 = vcmp.eq.s32.totalorder %v2114_v6, %v410_v31  ;;  %vm450_vm0 = vcmp.eq.s32.totalorder %v2117_v12, %v410_v31  ;;  %v1707_v30 = vld [vmem:[#allocation7] ss:$8 sps:$4 sm:$0xff]  }
  0xea   : > { %vm463_vm5 = vmor %vm366_vm2, %vm447_vm3  ;;  %991 = vmatmul.mubr.bf16.vlgmr.msra.gmra.mxu0 %v1547_v28  ;;  %v1705_v28 = vld [vmem:[#allocation7 + $0x4] ss:$8 sps:$4 sm:$0xff]   ;;  %v1870_v29 = vmov 0  }
  0xeb   : > { %vm464_vm7 = vmor %vm367_vm9, %vm448_vm6  ;;  %1281 = vmatprep.mubr.bf16.mxu1 %v1870_v29 }
  0xec   : > { %vm465_vm1 = vmor %vm368_vm12, %vm449_vm13  ;;  %v499_v32 = vpop.permute.xlu0 %498  ;;  %v507_v33 = vpop.permute.xlu1 %506 }
  0xed   : > { %vm466_vm11 = vmor %vm369_vm10, %vm450_vm0  ;;  %vm544_vm4 = vcmp.eq.s32.totalorder %v2114_v6, %v499_v32  ;;  %vm545_vm14 = vcmp.eq.s32.totalorder %v2117_v12, %v499_v32  ;;  %vm546_vm2 = vcmp.eq.s32.totalorder %v2114_v6, %v507_v33  ;;  %vm547_vm3 = vcmp.eq.s32.totalorder %v2117_v12, %v507_v33 }
  0xee   : > { %vm560_vm8 = vmor %vm463_vm5, %vm544_vm4 }
  0xef   : > { %vm561_vm15 = vmor %vm464_vm7, %vm545_vm14 }
  0xf0   : > { %vm562_vm6 = vmor %vm465_vm1, %vm546_vm2  ;;  %v596_v34 = vpop.permute.xlu0 %595  ;;  %v604_v35 = vpop.permute.xlu1 %603 }
  0xf1   : > { %vm563_vm9 = vmor %vm466_vm11, %vm547_vm3  ;;  %vm641_vm12 = vcmp.eq.s32.totalorder %v2114_v6, %v596_v34  ;;  %vm642_vm13 = vcmp.eq.s32.totalorder %v2117_v12, %v596_v34  ;;  %vm643_vm4 = vcmp.eq.s32.totalorder %v2114_v6, %v604_v35  ;;  %vm644_vm5 = vcmp.eq.s32.totalorder %v2117_v12, %v604_v35 }
  0xf2   : > { %vm657_vm0 = vmor %vm560_vm8, %vm641_vm12 }
  0xf3   : > { %vm658_vm10 = vmor %vm561_vm15, %vm642_vm13 }
  0xf4   : > { %vm659_vm7 = vmor %vm562_vm6, %vm643_vm4  ;;  %v693_v36 = vpop.permute.xlu0 %692  ;;  %v701_v37 = vpop.permute.xlu1 %700 }
  0xf5   : > { %vm660_vm14 = vmor %vm563_vm9, %vm644_vm5  ;;  %vm738_vm1 = vcmp.eq.s32.totalorder %v2114_v6, %v693_v36  ;;  %vm739_vm2 = vcmp.eq.s32.totalorder %v2117_v12, %v693_v36  ;;  %vm740_vm8 = vcmp.eq.s32.totalorder %v2114_v6, %v701_v37  ;;  %vm741_vm12 = vcmp.eq.s32.totalorder %v2117_v12, %v701_v37 }
  0xf6   : > { %vm754_vm3 = vmor %vm657_vm0, %vm738_vm1 }
  0xf7   : > { %vm755_vm11 = vmor %vm658_vm10, %vm739_vm2  ;;  %v1489_v39 = vsel %vm754_vm3, 1.0, %v1869_v22 }
  0xf8   : > { %vm756_vm13 = vmor %vm659_vm7, %vm740_vm8  ;;  %v340_v38 = vpop.permute.xlu0 %339  ;;  %v1490_v41 = vsel %vm755_vm11, 1.0, %v1869_v22  ;;  %v347_v43 = vpop.permute.xlu1 %346 }
  0xf9   : > { %vm757_vm15 = vmor %vm660_vm14, %vm741_vm12  ;;  %v1491_v40 = vsel %vm756_vm13, 1.0, %v1869_v22  ;;  %vm370_vm6 = vcmp.eq.s32.totalorder %v2114_v6, %v340_v38  ;;  %vm371_vm10 = vcmp.eq.s32.totalorder %v2117_v12, %v340_v38  ;;  %vm372_vm5 = vcmp.eq.s32.totalorder %v2114_v6, %v347_v43 }
  0xfa   : > { %v1492_v42 = vsel %vm757_vm15, 1.0, %v1869_v22  ;;  %v1549_v44 = vpack.c.bf16 %v1491_v40, %v1489_v39  ;;  %vm373_vm2 = vcmp.eq.s32.totalorder %v2117_v12, %v347_v43 }
  0xfb   : > { %v1550_v45 = vpack.c.bf16 %v1492_v42, %v1490_v41 }
  0xfc   : > { %v418_v46 = vpop.permute.xlu0 %417  ;;  %v426_v47 = vpop.permute.xlu1 %425 }
  0xfd   : > { %998 = vmatprep.mubr.bf16.mxu0 %v1550_v45  ;;  %vm451_vm9 = vcmp.eq.s32.totalorder %v2114_v6, %v418_v46  ;;  %vm452_vm0 = vcmp.eq.s32.totalorder %v2117_v12, %v418_v46  ;;  %vm453_vm14 = vcmp.eq.s32.totalorder %v2114_v6, %v426_v47  ;;  %vm454_vm1 = vcmp.eq.s32.totalorder %v2117_v12, %v426_v47 }
  0xfe   : > { %vm467_vm4 = vmor %vm370_vm6, %vm451_vm9  ;;  %999 = vmatmul.mubr.bf16.gmra.mxu0 %v1549_v44 }
  0xff   : > { %vm468_vm7 = vmor %vm371_vm10, %vm452_vm0 }
 0x100   : > { %vm469_vm3 = vmor %vm372_vm5, %vm453_vm14  ;;  %v515_v48 = vpop.permute.xlu0 %514  ;;  %v523_v49 = vpop.permute.xlu1 %522 }
 0x101   : > { %vm470_vm11 = vmor %vm373_vm2, %vm454_vm1  ;;  %vm548_vm8 = vcmp.eq.s32.totalorder %v2114_v6, %v515_v48  ;;  %vm549_vm12 = vcmp.eq.s32.totalorder %v2117_v12, %v515_v48  ;;  %vm550_vm6 = vcmp.eq.s32.totalorder %v2114_v6, %v523_v49  ;;  %vm551_vm9 = vcmp.eq.s32.totalorder %v2117_v12, %v523_v49 }
 0x102   : > { %vm564_vm13 = vmor %vm467_vm4, %vm548_vm8 }
 0x103   : > { %vm565_vm15 = vmor %vm468_vm7, %vm549_vm12 }
 0x104   : > { %vm566_vm0 = vmor %vm469_vm3, %vm550_vm6  ;;  %v612_v50 = vpop.permute.xlu0 %611  ;;  %v620_v51 = vpop.permute.xlu1 %619 }
 0x105   : > { %vm567_vm10 = vmor %vm470_vm11, %vm551_vm9  ;;  %vm645_vm5 = vcmp.eq.s32.totalorder %v2114_v6, %v612_v50  ;;  %vm646_vm14 = vcmp.eq.s32.totalorder %v2117_v12, %v612_v50  ;;  %vm647_vm4 = vcmp.eq.s32.totalorder %v2114_v6, %v620_v51  ;;  %vm648_vm8 = vcmp.eq.s32.totalorder %v2117_v12, %v620_v51 }
 0x106   : > { %vm661_vm1 = vmor %vm564_vm13, %vm645_vm5 }
 0x107   : > { %vm662_vm2 = vmor %vm565_vm15, %vm646_vm14 }
 0x108   : > { %vm663_vm7 = vmor %vm566_vm0, %vm647_vm4  ;;  %v709_v52 = vpop.permute.xlu0 %708  ;;  %v717_v53 = vpop.permute.xlu1 %716 }
 0x109   : > { %vm664_vm12 = vmor %vm567_vm10, %vm648_vm8  ;;  %vm742_vm3 = vcmp.eq.s32.totalorder %v2114_v6, %v709_v52  ;;  %vm743_vm6 = vcmp.eq.s32.totalorder %v2117_v12, %v709_v52  ;;  %vm744_vm5 = vcmp.eq.s32.totalorder %v2114_v6, %v717_v53  ;;  %vm745_vm13 = vcmp.eq.s32.totalorder %v2117_v12, %v717_v53 }
 0x10a   : > { %vm758_vm9 = vmor %vm661_vm1, %vm742_vm3 }
 0x10b   : > { %vm759_vm11 = vmor %vm662_vm2, %vm743_vm6  ;;  %v1493_v55 = vsel %vm758_vm9, 1.0, %v1869_v22 }
 0x10c   : > { %vm760_vm14 = vmor %vm663_vm7, %vm744_vm5  ;;  %v354_v54 = vpop.permute.xlu0 %353  ;;  %v1494_v57 = vsel %vm759_vm11, 1.0, %v1869_v22  ;;  %v361_v59 = vpop.permute.xlu1 %360 }
 0x10d   : > { %vm761_vm15 = vmor %vm664_vm12, %vm745_vm13  ;;  %v1495_v56 = vsel %vm760_vm14, 1.0, %v1869_v22  ;;  %vm374_vm0 = vcmp.eq.s32.totalorder %v2114_v6, %v354_v54  ;;  %vm375_vm2 = vcmp.eq.s32.totalorder %v2117_v12, %v354_v54  ;;  %vm376_vm8 = vcmp.eq.s32.totalorder %v2114_v6, %v361_v59 }
 0x10e   : > { %v1496_v58 = vsel %vm761_vm15, 1.0, %v1869_v22  ;;  %v1551_v60 = vpack.c.bf16 %v1495_v56, %v1493_v55  ;;  %vm377_vm6 = vcmp.eq.s32.totalorder %v2117_v12, %v361_v59 }
 0x10f   : > { %v1552_v61 = vpack.c.bf16 %v1496_v58, %v1494_v57 }
 0x110   : > { %v434_v62 = vpop.permute.xlu0 %433  ;;  %v442_v63 = vpop.permute.xlu1 %441 }
 0x111   : > { %1006 = vmatprep.mubr.bf16.mxu0 %v1552_v61  ;;  %vm455_vm10 = vcmp.eq.s32.totalorder %v2114_v6, %v434_v62  ;;  %vm456_vm1 = vcmp.eq.s32.totalorder %v2117_v12, %v434_v62  ;;  %vm457_vm12 = vcmp.eq.s32.totalorder %v2114_v6, %v442_v63  ;;  %vm458_vm3 = vcmp.eq.s32.totalorder %v2117_v12, %v442_v63 }
 0x112   : > { %vm471_vm4 = vmor %vm374_vm0, %vm455_vm10  ;;  %1007 = vmatmul.mubr.bf16.gmra.mxu0 %v1551_v60 }
 0x113   : > { %vm472_vm7 = vmor %vm375_vm2, %vm456_vm1 }
 0x114   : > { %vm473_vm9 = vmor %vm376_vm8, %vm457_vm12  ;;  %v531_v5 = vpop.permute.xlu0 %530  ;;  %v539_v7 = vpop.permute.xlu1 %538 }
 0x115   : > { %vm474_vm11 = vmor %vm377_vm6, %vm458_vm3  ;;  %vm552_vm5 = vcmp.eq.s32.totalorder %v2114_v6, %v531_v5  ;;  %vm553_vm13 = vcmp.eq.s32.totalorder %v2117_v12, %v531_v5  ;;  %vm554_vm0 = vcmp.eq.s32.totalorder %v2114_v6, %v539_v7  ;;  %vm555_vm10 = vcmp.eq.s32.totalorder %v2117_v12, %v539_v7 }
 0x116   : > { %vm568_vm14 = vmor %vm471_vm4, %vm552_vm5 }
 0x117   : > { %vm569_vm15 = vmor %vm472_vm7, %vm553_vm13 }
 0x118   : > { %vm570_vm1 = vmor %vm473_vm9, %vm554_vm0  ;;  %v628_v8 = vpop.permute.xlu0 %627  ;;  %v636_v1 = vpop.permute.xlu1 %635 }
 0x119   : > { %vm571_vm2 = vmor %vm474_vm11, %vm555_vm10  ;;  %vm649_vm8 = vcmp.eq.s32.totalorder %v2114_v6, %v628_v8  ;;  %vm650_vm12 = vcmp.eq.s32.totalorder %v2117_v12, %v628_v8  ;;  %vm651_vm6 = vcmp.eq.s32.totalorder %v2114_v6, %v636_v1  ;;  %vm652_vm4 = vcmp.eq.s32.totalorder %v2117_v12, %v636_v1 }
 0x11a   : > { %vm665_vm3 = vmor %vm568_vm14, %vm649_vm8 }
 0x11b   : > { %vm666_vm5 = vmor %vm569_vm15, %vm650_vm12 }
 0x11c   : > { %v725_v9 = vpop.permute.xlu0 %724  ;;  %vm667_vm7 = vmor %vm570_vm1, %vm651_vm6  ;;  %v733_v4 = vpop.permute.xlu1 %732  ;;  %vm1147_vm1 = vcmask 1041409   ;;  %vm1156_vm6 = vcmask 1044484  }
 0x11d   : > { %vm746_vm13 = vcmp.eq.s32.totalorder %v2114_v6, %v725_v9  ;;  %vm747_vm0 = vcmp.eq.s32.totalorder %v2117_v12, %v725_v9  ;;  %vm668_vm9 = vmor %vm571_vm2, %vm652_vm4  ;;  %vm748_vm8 = vcmp.eq.s32.totalorder %v2114_v6, %v733_v4  ;;  %vm749_vm14 = vcmp.eq.s32.totalorder %v2117_v12, %v733_v4  ;;  %v1687_v6 = vld [vmem:[#allocation7 + $0x64] ss:$8 sps:$4 sm:$0xff]   ;;  %v1689_v12 = vld [vmem:[#allocation7 + $0x60] ss:$8 sps:$4 sm:$0xff]  }
 0x11e   : > { %vm762_vm10 = vmor %vm665_vm3, %vm746_vm13  ;;  %1251 = vmatprep.subr.bf16.mxu1 %v1687_v6  ;;  %vm1150_vm2 = vcmask 1042434   ;;  %vm1153_vm3 = vcmask 1043459   ;;  %vm1159_vm4 = vcmask 1045509  }
 0x11f   : > { %vm763_vm11 = vmor %vm666_vm5, %vm747_vm0  ;;  %v1497_v10 = vsel %vm762_vm10, 1.0, %v1869_v22  ;;  %1252 = vmatpush1.bf16.msra.mxu1 %v1689_v12  ;;  %vm1162_vm5 = vcmask 1046534  }
 0x120   : > { %vm764_vm12 = vmor %vm667_vm7, %vm748_vm8  ;;  %v1498_v13 = vsel %vm763_vm11, 1.0, %v1869_v22  ;;  %1253 = vmatprep.subr.bf16.mxu1 %v1690_v18  ;;  %vm1165_vm7 = vcmask 1047559  }
 0x121   : > { %vm765_vm15 = vmor %vm668_vm9, %vm749_vm14  ;;  %v1499_v11 = vsel %vm764_vm12, 1.0, %v1869_v22 }
 0x122   : > { %v1500_v14 = vsel %vm765_vm15, 1.0, %v1869_v22  ;;  %v1553_v0 = vpack.c.bf16 %v1499_v11, %v1497_v10  ;;  %v1696_v22 = vld [vmem:[#allocation7 + $0x34] ss:$8 sps:$4 sm:$0xff]  }
 0x123   : > { %v1554_v15 = vpack.c.bf16 %v1500_v14, %v1498_v13  ;;  %1254 = vmatpush1.bf16.msra.mxu1 %v1692_v19 }
 0x124   : > { %1255 = vmatprep.subr.bf16.mxu1 %v1693_v20 }
 0x125   : > { %1014 = vmatprep.mubr.bf16.mxu0 %v1554_v15 }
 0x126   : > { %1015 = vmatmul.mubr.bf16.gmra.mxu0 %v1553_v0 }
 0x127   : > { %1256 = vmatpush1.bf16.msra.mxu1 %v1695_v21 }
 0x128   : > { %1257 = vmatprep.subr.bf16.mxu1 %v1696_v22 }
 0x12b   : > { %1258 = vmatpush1.bf16.msra.mxu1 %v1698_v23  ;;  %v1525_v23 = vld [vmem:[%s2337_s2] ss:$0 sm:$0xff] }
 0x12c   : > { %1259 = vmatprep.subr.bf16.mxu1 %v1699_v24 }
 0x12f   : > { %1260 = vmatpush1.bf16.msra.mxu1 %v1701_v25 }
 0x130   : > { %1261 = vmatprep.subr.bf16.mxu1 %v1702_v26 }
 0x133   : > { %1262 = vmatpush1.bf16.msra.mxu1 %v1704_v27 }
 0x134   : > { %1263 = vmatprep.subr.bf16.mxu1 %v1705_v28 }
 0x137   : > { %1264 = vmatpush1.bf16.msra.mxu1 %v1707_v30 }
 0x1aa   : > { %v1571_v31 = vpop.f32.mrf.mxu0 }
 0x1ac   : > { %v1572_v32 = vpop.f32.mrf.mxu0 }
 0x1ad   : > { %v1573_v46 = vadd.f32 %v1572_v32, %v1571_v31 }
 0x1ae   : > { %v1574_v33 = vpop.f32.mrf.mxu0 }
 0x1af   : > { %v1023_v54 = vrot.slane %v1573_v46, 4 }
 0x1b0   : > { %v1575_v34 = vpop.f32.mrf.mxu0 }
 0x1b1   : > { %v1576_v39 = vadd.f32 %v1575_v34, %v1574_v33  ;;  %v1024_v61 = vmax.f32 %v1573_v46, %v1023_v54 }
 0x1b3   : > { %v1029_v43 = vrot.slane %v1576_v39, 4  ;;  %v1025_v9 = vrot.slane %v1024_v61, 2 }
 0x1b5   : > { %v1030_v50 = vmax.f32 %v1576_v39, %v1029_v43  ;;  %v1026_v0 = vmax.f32 %v1024_v61, %v1025_v9 }
 0x1b7   : > { %v1031_v58 = vrot.slane %v1030_v50, 2  ;;  %v1027_v20 = vrot.slane %v1026_v0, 1 }
 0x1b9   : > { %v1032_v7 = vmax.f32 %v1030_v50, %v1031_v58  ;;  %v1028_v31 = vmax.f32 %v1026_v0, %v1027_v20 }
 0x1bb   : > { %v1033_v11 = vrot.slane %v1032_v7, 1 }
 0x1bd   : > { %v1034_v6 = vmax.f32 %v1032_v7, %v1033_v11 }
 0x1be   : > { %v1577_v35 = vpop.f32.mrf.mxu0 }
 0x1bf   : > { %v1079_v26 = vadd.f32 %v1525_v23, %v1034_v6 }
 0x1c0   : > { %v1578_v36 = vpop.f32.mrf.mxu0 }
 0x1c1   : > { %v1579_v40 = vadd.f32 %v1578_v36, %v1577_v35  ;;  %v2218_v36 = vmax.f32 %v1079_v26, 0.0 }
 0x1c2   : > { %v1580_v37 = vpop.f32.mrf.mxu0 }
 0x1c3   : > { %v1035_v44 = vrot.slane %v1579_v40, 4  ;;  %v1095_v46 = vpack.c.bf16 %v2218_v36, %v2218_v36 }
 0x1c4   : > { %v1581_v38 = vpop.f32.mrf.mxu0 }
 0x1c5   : > { %v1582_v41 = vadd.f32 %v1581_v38, %v1580_v37  ;;  %v1036_v52 = vmax.f32 %v1579_v40, %v1035_v44 }
 0x1c7   : > { %v1041_v47 = vrot.slane %v1582_v41, 4  ;;  %v1037_v60 = vrot.slane %v1036_v52, 2 }
 0x1c9   : > { %v1042_v55 = vmax.f32 %v1582_v41, %v1041_v47  ;;  %v1038_v1 = vmax.f32 %v1036_v52, %v1037_v60  ;;  %v1078_v41 = vadd.f32 %v1525_v23, %v1028_v31 }
 0x1cb   : > { %v1043_v62 = vrot.slane %v1042_v55, 2  ;;  %v1039_v14 = vrot.slane %v1038_v1, 1 }
 0x1cd   : > { %v1044_v4 = vmax.f32 %v1042_v55, %v1043_v62  ;;  %v1040_v18 = vmax.f32 %v1038_v1, %v1039_v14 }
 0x1cf   : > { %v1045_v15 = vrot.slane %v1044_v4, 1  ;;  %v1080_v29 = vadd.f32 %v1525_v23, %v1040_v18 }
 0x1d1   : > { %v1046_v21 = vmax.f32 %v1044_v4, %v1045_v15  ;;  %v2220_v40 = vmax.f32 %v1080_v29, 0.0 }
 0x1d2   : > { %v1583_v42 = vpop.f32.mrf.mxu0 }
 0x1d3   : > { %v1081_v32 = vadd.f32 %v1525_v23, %v1046_v21  ;;  %v1096_v50 = vpack.c.bf16 %v2220_v40, %v2220_v40 }
 0x1d4   : > { %v1584_v45 = vpop.f32.mrf.mxu0 }
 0x1d5   : > { %v1585_v48 = vadd.f32 %v1584_v45, %v1583_v42  ;;  %v2222_v42 = vmax.f32 %v1081_v32, 0.0  ;;  %v1140_v60 = vunpack.c.l.b16 %v1096_v50 }
 0x1d6   : > { %v1586_v49 = vpop.f32.mrf.mxu0 }
 0x1d7   : > { %v1047_v51 = vrot.slane %v1585_v48, 4  ;;  %v1097_v52 = vpack.c.bf16 %v2222_v42, %v2222_v42 }
 0x1d8   : > { %v1587_v53 = vpop.f32.mrf.mxu0 }
 0x1d9   : > { %v1588_v56 = vadd.f32 %v1587_v53, %v1586_v49  ;;  %v1048_v57 = vmax.f32 %v1585_v48, %v1047_v51  ;;  %v2232_v51 = vmax.f32 %v1078_v41, 0.0  ;;  %v1141_v62 = vunpack.c.l.b16 %v1097_v52 }
 0x1da   : > { %v1307_v41 = vrot.slane %v2220_v40, 6 }
 0x1db   : > { %v1053_v59 = vrot.slane %v1588_v56, 4  ;;  %v1049_v5 = vrot.slane %v1048_v57, 2  ;;  %v1094_v61 = vpack.c.bf16 %v2232_v51, %v2232_v51 }
 0x1dd   : > { %v1054_v63 = vmax.f32 %v1588_v56, %v1053_v59  ;;  %v1050_v10 = vmax.f32 %v1048_v57, %v1049_v5  ;;  %v1139_v56 = vunpack.c.l.b16 %v1095_v46  ;;  %v1138_v11 = vunpack.c.l.b16 %v1094_v61 }
 0x1df   : > { %v1055_v8 = vrot.slane %v1054_v63, 2  ;;  %v1051_v16 = vrot.slane %v1050_v10, 1 }
 0x1e1   : > { %v1056_v13 = vmax.f32 %v1054_v63, %v1055_v8  ;;  %v1052_v24 = vmax.f32 %v1050_v10, %v1051_v16  ;;  %v1146_v8 = vrot.slane %v1139_v56, 7  ;;  %v1149_v10 = vrot.slane %v1140_v60, 6 }
 0x1e3   : > { %v1057_v12 = vrot.slane %v1056_v13, 1  ;;  %v1082_v35 = vadd.f32 %v1525_v23, %v1052_v24 }
 0x1e5   : > { %v1058_v27 = vmax.f32 %v1056_v13, %v1057_v12  ;;  %v2224_v45 = vmax.f32 %v1082_v35, 0.0  ;;  %v1152_v13 = vrot.slane %v1141_v62, 5 }
 0x1e6   : > { %v1589_v17 = vpop.f32.mrf.mxu0 }
 0x1e7   : > { %v1083_v37 = vadd.f32 %v1525_v23, %v1058_v27  ;;  %v1098_v55 = vpack.c.bf16 %v2224_v45, %v2224_v45  ;;  %v1118_v27 = vld [vmem:[%s2339_s4] sm:$0x3] }
 0x1e8   : > { %v1590_v19 = vpop.f32.mrf.mxu0 }
 0x1e9   : > { %v1591_v22 = vadd.f32 %v1590_v19, %v1589_v17  ;;  %v2228_v47 = vmax.f32 %v1083_v37, 0.0  ;;  %v1142_v7 = vunpack.c.l.b16 %v1098_v55  ;;  %v1148_v17 = vsel %vm1147_vm1, %v1146_v8, %v1138_v11 }
 0x1ea   : > { %v1592_v25 = vpop.f32.mrf.mxu0  ;;  %v1151_v12 = vsel %vm1150_vm2, %v1149_v10, %v1148_v17 }
 0x1eb   : > { %v1059_v28 = vrot.slane %v1591_v22, 4  ;;  %v1099_v57 = vpack.c.bf16 %v2228_v47, %v2228_v47  ;;  %v1155_v15 = vrot.slane %v1142_v7, 4  ;;  %v1154_v20 = vsel %vm1153_vm3, %v1152_v13, %v1151_v12 }
 0x1ec   : > { %v1593_v30 = vpop.f32.mrf.mxu0 }
 0x1ed   : > { %v1060_v33 = vmax.f32 %v1591_v22, %v1059_v28  ;;  %v1594_v34 = vadd.f32 %v1593_v30, %v1592_v25  ;;  %v1143_v4 = vunpack.c.l.b16 %v1099_v57  ;;  %v1157_v21 = vsel %vm1156_vm6, %v1155_v15, %v1154_v20 }
 0x1ee   : > { %v1127_v28 = vrot.slane %v1118_v27, %v2041_v3  ;;  %v1311_v3 = vrot.slane %v2224_v45, 4 }
 0x1ef   : > { %v1061_v38 = vrot.slane %v1060_v33, 2  ;;  %v1065_v39 = vrot.slane %v1594_v34, 4  ;;  %v1158_v6 = vrot.slane %v1143_v4, 3 }
 0x1f1   : > { %v1062_v43 = vmax.f32 %v1060_v33, %v1061_v38  ;;  %v1066_v44 = vmax.f32 %v1594_v34, %v1065_v39  ;;  %v1160_v22 = vsel %vm1159_vm4, %v1158_v6, %v1157_v21  ;;  %v1123_v38 = vrot.slane %v1118_v27, %v2038_v2 }
 0x1f2   : > { %v1305_v39 = vrot.slane %v2218_v36, 7 }
 0x1f3   : > { %v1063_v48 = vrot.slane %v1062_v43, 1  ;;  %v1067_v49 = vrot.slane %v1066_v44, 2 }
 0x1f4   : > { %v1306_v46 = vsel %vm1147_vm1, %v1305_v39, %v2232_v51 }
 0x1f5   : > { %v1064_v53 = vmax.f32 %v1062_v43, %v1063_v48  ;;  %v1068_v54 = vmax.f32 %v1066_v44, %v1067_v49  ;;  %v1309_v43 = vrot.slane %v2222_v42, 5  ;;  %v1313_v48 = vrot.slane %v2228_v47, 3 }
 0x1f6   : > { %v1308_v49 = vsel %vm1150_vm2, %v1307_v41, %v1306_v46 }
 0x1f7   : > { %v1084_v58 = vadd.f32 %v1525_v23, %v1064_v53  ;;  %v1069_v59 = vrot.slane %v1068_v54, 1  ;;  %v1310_v2 = vsel %vm1153_vm3, %v1309_v43, %v1308_v49 }
 0x1f9   : > { %v2242_v63 = vmax.f32 %v1084_v58, 0.0  ;;  %v1070_v5 = vmax.f32 %v1068_v54, %v1069_v59  ;;  %v1312_v54 = vsel %vm1156_vm6, %v1311_v3, %v1310_v2 }
 0x1fa   : > { %v1314_v55 = vsel %vm1159_vm4, %v1313_v48, %v1312_v54 }
 0x1fb   : > { %v1085_v1 = vadd.f32 %v1525_v23, %v1070_v5  ;;  %v1100_v9 = vpack.c.bf16 %v2242_v63, %v2242_v63  ;;  %v1315_v50 = vrot.slane %v2242_v63, 2 }
 0x1fd   : > { %v2246_v14 = vmax.f32 %v1085_v1, 0.0  ;;  %v1144_v0 = vunpack.c.l.b16 %v1100_v9  ;;  %v1316_v56 = vsel %vm1162_vm5, %v1315_v50, %v1314_v55 }
 0x1ff   : > { %v1101_v16 = vpack.c.bf16 %v2246_v14, %v2246_v14  ;;  %v1161_v18 = vrot.slane %v1144_v0, 2  ;;  %v1317_v52 = vrot.slane %v2246_v14, 1 }
 0x201   : > { %v1145_v19 = vunpack.c.l.b16 %v1101_v16  ;;  %v1163_v24 = vsel %vm1162_vm5, %v1161_v18, %v1160_v22  ;;  %v1318_v57 = vsel %vm1165_vm7, %v1317_v52, %v1316_v56 }
 0x203   : > { %v1164_v23 = vrot.slane %v1145_v19, 1 }
 0x205   : > { %v1166_v25 = vsel %vm1165_vm7, %v1164_v23, %v1163_v24 }
 0x206   : > { %v1167_v26 = vpack.c.b16 %v1166_v25, %v1166_v25 }
 0x208   : > { %1282 = vmatmul.mubr.bf16.vlgmr.msra.gmra.mxu1 %v1167_v26 }
 0x2c8   : > { %v1283_v29 = vpop.f32.mrf.mxu1 }
 0x2c9   : > { %v1284_v44 = vadd.f32 %v1283_v29, %v1123_v38 }
 0x2ca   : > { %v1285_v30 = vpop.f32.mrf.mxu1 }
 0x2cb   : > { %v1286_v31 = vadd.f32 %v1285_v30, %v1127_v28  ;;  %v1290_v53 = vmax.f32 %v1284_v44, 0.0 }
 0x2cc   : > { %v1287_v32 = vpop.f32.mrf.mxu1 }
 0x2cd   : > { %v1542_v33 = vmul.f32 -1.442695, %v1286_v31  ;;  %v1320_v58 = vsub.f32 %v1290_v53, %v1318_v57 }
 0x2ce   : > { %v1288_v34 = vpop.f32.mrf.mxu1 }
 0x2cf   : > { %1708 = vpow2.f32 %v1542_v33 }
 0x2dc   : > { %v1709_v35 = vpop.eup %1708 }
 0x2dd   : > { %v1294_v37 = vadd.f32 1.0, %v1709_v35 }
 0x2df   : > { %1710 = vrcp.f32 %v1294_v37 }
 0x2ec   : > { %v1711_v59 = vpop.eup %1710 }
 0x2ed   : > { %v1321_v60 = vmul.f32 %v1711_v59, %v1320_v58 }
 0x2ef   : > { %v1323_v61 = vrot.slane %v1321_v60, 1  ;;  %v1324_v62 = vrot.slane %v1321_v60, 2  ;;  %v1325_v5 = vrot.slane %v1321_v60, 3  ;;  %v1326_v7 = vrot.slane %v1321_v60, 4 }
 0x2f0   : > { %v1327_v8 = vrot.slane %v1321_v60, 5  ;;  %v1328_v1 = vrot.slane %v1321_v60, 6  ;;  %v1329_v9 = vrot.slane %v1321_v60, 7  ;;  %v1338_v0 = vadd.f32 %v1321_v60, %v2232_v51 }
 0x2f1   : > { %v1339_v4 = vadd.f32 %v1323_v61, %v2218_v36  ;;  %v1340_v10 = vadd.f32 %v1324_v62, %v2220_v40  ;;  %v1341_v11 = vadd.f32 %v1325_v5, %v2222_v42  ;;  %v1342_v13 = vadd.f32 %v1326_v7, %v2224_v45 }
 0x2f2   : > { %v1343_v15 = vadd.f32 %v1327_v8, %v2228_v47  ;;  %v1344_v6 = vadd.f32 %v1328_v1, %v2242_v63  ;;  %v1345_v12 = vadd.f32 %v1329_v9, %v2246_v14 }
 0x2f3   : > { %v1354_v16 = vrot.slane %v1339_v4, 7  ;;  %v1356_v17 = vrot.slane %v1340_v10, 6  ;;  %v1358_v18 = vrot.slane %v1341_v11, 5  ;;  %v1360_v19 = vrot.slane %v1342_v13, 4 }
 0x2f4   : > { %v1362_v45 = vrot.slane %v1343_v15, 3  ;;  %v1364_v51 = vrot.slane %v1344_v6, 2  ;;  %v1366_v14 = vrot.slane %v1345_v12, 1 }
 0x2f5   : > { %v1355_v36 = vsel %vm1147_vm1, %v1354_v16, %v1338_v0 }
 0x2f6   : > { %v1357_v40 = vsel %vm1150_vm2, %v1356_v17, %v1355_v36 }
 0x2f7   : > { %v1359_v42 = vsel %vm1153_vm3, %v1358_v18, %v1357_v40 }
 0x2f8   : > { %v1361_v47 = vsel %vm1156_vm6, %v1360_v19, %v1359_v42 }
 0x2f9   : > { %v1363_v63 = vsel %vm1159_vm4, %v1362_v45, %v1361_v47 }
 0x2fa   : > { %v1365_v20 = vsel %vm1162_vm5, %v1364_v51, %v1363_v63 }
 0x2fb   : > { %v1367_v21 = vsel %vm1165_vm7, %v1366_v14, %v1365_v20 }
 0x2fc   : > { %1369 = vst [vmem:[%s268_s14] sm:$0xff] %v1367_v21 }
 0x2fd   : > { %1805 = shalt.err (!%p1802_p9)
}
 0x2fe   : > { %s1806_s27 = scalar_lea.hbm %s2297_s29, 128  ;;  %s1810_s26 = scalar_lea.hbm %s2340_s5, 256 }
 0x2ff   : > { %p1807_p13 = scmp.ne.s32.totalorder %s2297_s29, %s1806_s27  ;;  %p1811_p4 = scmp.lt.s32.totalorder %s2297_s29, %s2340_s5 }
 0x300   : > { %p1812_p8 = scmp.lt.s32.totalorder %s1810_s26, %s1806_s27 }
 0x301   : > { %p1808_p5 = pnand %p1807_p13, %p2356_p0 }
 0x302   : > { %p1813_p7 = por %p1812_p8, %p1811_p4 }
 0x303   : > { %p1809_p10 = pneg %p1808_p5 }
 0x305   : > { %p1814_p11 = pnand %p1813_p7, %p1809_p10 }
 0x307   : > { %1817 = shalt.err (!%p1814_p11)
}
 0x308   : > { %1605 = dma.vmem_to_hbm [thread:$0]  (%p2356_p0), %s1385_s6, 128, %s2297_s29, %s1371_s22  }
 0x309 PF: > { %s1396_s13 = sand.u32 1, %s1848_s18   ;;  %p2357_p1 = scmp.ne.s32.totalorder %s2346_s25, 0 }
 0x30a   : > { %p2358_p2 = scmp.ge.s32.totalorder %s1860_s21, 2  ;;  %s1397_s14 = scalar_lea.sflag [#allocation4], %s1396_s13 }
 0x30c   : > { %p1619_p6 = pnand %p2358_p2, %p2357_p1 }
 0x30e   : > { %p1620_p12 = pneg %p1619_p6 }
 0x310   : > { %1843 = dma.done.wait (%p1620_p12), %s1397_s14, 128  }
 0x311   : > { %1845 = vsyncadd (%p1620_p12), %s1397_s14, 4294967168  ;;  %p19_p3 = scmp.ge.s32.totalorder %s1974_s17, 4   ;;  %s2359_s18 = smov %s1852_s19 }
 0x312   : > { %s2360_s19 = smov %s1856_s20  ;;  %s2361_s20 = smov %s1983_s28 }
 0x313   : > { %s2362_s21 = smov %s1974_s17  ;;  %21 = sbr.rel (!%p19_p3) target bundleno = 6 (0x6), region = 93 }
 0x318   :  { %1402 = vsyncpa [#allocation3], 1 }
 0x319   :  { %1404 = vsyncpa [#allocation3 + $0x1], 1 }
 0x31a   :  { %1405 = vsyncpa [#allocation6], 1 }
 0x31b   :  { %1406 = vsyncpa [#allocation4], 1 }
 0x31c   :  { %1408 = vsyncpa [#allocation4 + $0x1], 1 }

// kernel: tpu_custom_call.1
= control target key start
LH: loop header
LB: loop body
LE: loop exit
PB: predicated region body
PF: predicated region fallthrough
CT: control target
= control target key end

     0   :  { %10 = vsyncpa [#allocation3], 0  ;;  %s2335_s0 = inlined_call_operand.hbm [shape: s32[16,12], index: 0, kind: input, shape index: {}]   ;;  %s2336_s1 = inlined_call_operand.hbm [shape: bf16[256,128], index: 1, kind: input, shape index: {}]   ;;  %s2337_s2 = inlined_call_operand.vmem [shape: f32[1,128], index: 2, kind: input, shape index: {}]   ;;  %s2338_s3 = inlined_call_operand.hbm [shape: bf16[128,256], index: 3, kind: input, shape index: {}]   ;;  %s2339_s4 = inlined_call_operand.vmem [shape: f32[1,256], index: 4, kind: input, shape index: {}]   ;;  %s2340_s5 = inlined_call_operand.hbm [shape: f32[16,128], index: 5, kind: output, shape index: {}]  }
   0x1   :  { %12 = vsyncpa [#allocation3 + $0x1], 0 }
   0x2   :  { %13 = vsyncpa [#allocation6], 0 }
   0x3   :  { %14 = vsyncpa [#allocation4], 0 }
   0x4   :  { %16 = vsyncpa [#allocation4 + $0x1], 0  ;;  %s1902_s18 = smov 0   ;;  %s1904_s19 = smov 0  }
   0x5   :  { %s1906_s20 = smov 0   ;;  %s1908_s21 = smov 0  }
   0x6 LB: > { %s1923_s22 = sadd.s32 4294967295, %s1860_s21   ;;  %s1473_s23 = sadd.s32 4294967294, %s1860_s21   ;;  %s1860_s21 = sphi %s1908_s21, %s2362_s21   ;;  %s1856_s20 = sphi %s1906_s20, %s2361_s20   ;;  %s1852_s19 = sphi %s1904_s19, %s2360_s19   ;;  %s1848_s18 = sphi %s1902_s18, %s2359_s18  }
   0x7   : > { %p42_p0 = scmp.ne.s32.totalorder %s1852_s19, %s1848_s18  ;;  %p2341_p1 = scmp.eq.s32.totalorder %s1923_s22, 0 }
   0x8   : > { %p156_p3 = scmp.eq.s32.totalorder %s1473_s23, 1  ;;  %p1474_p5 = scmp.ge.s32.totalorder %s1860_s21, 1 }
   0x9   : > { %p1932_p4 = por %p2341_p1, %p42_p0  ;;  %p163_p7 = scmp.lt.s32.totalorder %s1860_s21, 3 }
   0xa   : > { %p1937_p6 = por %p156_p3, %p42_p0  ;;  %s1862_s27 = smov [#allocation5]  }
   0xb   : > { %s2345_s24 = scalar_select %p1932_p4, 1, 0 }
   0xc   : > { %s2346_s25 = scalar_select %p1937_p6, 1, 0 }
   0xd   : > { %p1942_p8 = pnand %p1474_p5, %p163_p7  ;;  %s175_s28 = sshll.u32 %s1862_s27, 4  ;;  %s176_s28 = int_to_ptr.vmem [resolvable:$true] %s175_s28 }
   0xe   : > { %s1863_s30 = smov [#allocation7]   ;;  %s1723_s7 = scalar_lea.vmem %s176_s28, 2048 }
   0xf   : > { %s2347_s26 = scalar_select %p1942_p8, 1, 0 }
  0x10   : > { %p1607_p9 = pneg %p1942_p8  ;;  %s191_s6 = sshll.u32 %s1863_s30, 4  ;;  %s192_s6 = int_to_ptr.vmem [resolvable:$true] %s191_s6 }
  0x11   : > { %p1724_p13 = scmp.ne.s32.totalorder %s176_s28, %s1723_s7  ;;  %p1731_p5 = scmp.lt.s32.totalorder %s176_s28, %s176_s28 }
  0x12   : > { %p1951_p11 = pnand %p1607_p9, %p2341_p1  ;;  %p1732_p7 = scmp.lt.s32.totalorder %s1723_s7, %s1723_s7 }
  0x14   : > { %p1714_p12 = pneg %p1951_p11  ;;  %p1733_p10 = por %p1732_p7, %p1731_p5 }
  0x16   : > { %p1726_p0 = pnand %p1724_p13, %p1714_p12 }
  0x18   : > { %p1727_p3 = pneg %p1726_p0 }
  0x1a   : > { %p1734_p9 = pnand %p1733_p10, %p1727_p3 }
  0x1c   : > { %1737 = shalt.err (!%p1734_p9)
}
  0x1d   : > { %s1864_s8 = smov 64   ;;  %s1865_s9 = smov 4  }
  0x1e   : > { %1610 = dma.hbm_to_vmem [thread:$0]  (!%p1951_p11), %s2336_s1, 2048, %s176_s28, [#allocation6], %s1864_s8, %s1864_s8, %s1865_s9  }
  0x1f   : > { %s1749_s12 = scalar_lea.vmem %s192_s6, 2048  ;;  %p1757_p2 = scmp.lt.s32.totalorder %s192_s6, %s192_s6 }
  0x20   : > { %p1750_p1 = scmp.ne.s32.totalorder %s192_s6, %s1749_s12  ;;  %p1758_p6 = scmp.lt.s32.totalorder %s1749_s12, %s1749_s12 }
  0x22   : > { %p1752_p13 = pnand %p1750_p1, %p1714_p12  ;;  %p1759_p5 = por %p1758_p6, %p1757_p2 }
  0x24   : > { %p1753_p0 = pneg %p1752_p13 }
  0x26   : > { %p1760_p10 = pnand %p1759_p5, %p1753_p0 }
  0x28   : > { %1763 = shalt.err (!%p1760_p10)
}
  0x29   : > { %s1866_s13 = smov 128   ;;  %s1867_s14 = smov 8  }
  0x2a   : > { %1613 = dma.hbm_to_vmem [thread:$0]  (!%p1951_p11), %s2338_s3, 2048, %s192_s6, [#allocation6], %s1866_s13, %s1866_s13, %s1867_s14  }
  0x2b   : > { %s1974_s17 = sadd.s32 1, %s1860_s21   ;;  %s29_s27 = sadd.s32 1, %s1856_s20 }
  0x2c   : > { %s26_s23 = ssub.s32 %s1860_s21, %s1974_s17  ;;  %p36_p2 = scmp.ne.s32.totalorder %s1856_s20, %s1852_s19 }
  0x2d   : > { %p27_p1 = scmp.eq.s32.totalorder %s26_s23, 0  ;;  %p37_p6 = scmp.eq.s32.totalorder %s1860_s21, 0 }
  0x2e   : > { %p2349_p3 = scmp.eq.s32.totalorder %s1923_s22, 1  ;;  %p1624_p9 = scmp.lt.s32.totalorder %s1860_s21, 2 }
  0x2f   : > { %s1983_s28 = scalar_select %p27_p1, %s1856_s20, %s29_s27  }
  0x30   : > { %p38_p12 = por %p37_p6, %p36_p2  ;;  %p1987_p7 = por %p2349_p3, %p36_p2 }
  0x31   : > { %s208_s29 = sand.u32 1, %s1856_s20   ;;  %s1479_s6 = sshll.u32 %s1860_s21, 7 }
  0x32   : > { %s2350_s30 = scalar_select %p1987_p7, 1, 0 }
  0x33   : > { %s1478_s7 = sshll.u32 %s208_s29, 3  ;;  %s1997_s10 = scalar_lea.hbm %s2335_s0, %s1479_s6 }
  0x34   : > { %s212_s11 = scalar_lea.vmem [#allocation2], %s1478_s7  ;;  %p1999_p11 = pnand %p1624_p9, %p38_p12 }
  0x35   : > { %s219_s12 = sshll.u32 %s212_s11, 4  ;;  %s209_s14 = scalar_lea.sflag [#allocation3], %s208_s29  ;;  %s220_s12 = int_to_ptr.vmem [resolvable:$true] %s219_s12 }
  0x36   : > { %s1764_s15 = scalar_lea.hbm %s1997_s10, 128  ;;  %p1766_p0 = pneg %p1999_p11 }
  0x37   : > { %p1765_p13 = scmp.ne.s32.totalorder %s1997_s10, %s1764_s15  ;;  %s1769_s27 = scalar_lea.hbm %s2335_s0, 256 }
  0x38   : > { %p1770_p1 = scmp.lt.s32.totalorder %s1997_s10, %s2335_s0  ;;  %p1771_p2 = scmp.lt.s32.totalorder %s1769_s27, %s1764_s15 }
  0x39   : > { %p1767_p5 = pnand %p1766_p0, %p1765_p13 }
  0x3a   : > { %p1772_p6 = por %p1771_p2, %p1770_p1 }
  0x3b   : > { %p1768_p10 = pneg %p1767_p5 }
  0x3d   : > { %p1773_p12 = pnand %p1772_p6, %p1768_p10 }
  0x3f   : > { %1776 = shalt.err (!%p1773_p12)
}
  0x40   : > { %s1777_s8 = scalar_lea.vmem %s220_s12, 128  ;;  %s1868_s29 = smov [#allocation2]  }
  0x41   : > { %p1778_p3 = scmp.ne.s32.totalorder %s220_s12, %s1777_s8  ;;  %s1782_s9 = sshll.u32 %s1868_s29, 4  ;;  %s1783_s9 = int_to_ptr.vmem [resolvable:$false] %s1782_s9 }
  0x42   : > { %s1784_s11 = scalar_lea.vmem %s1783_s9, 256  ;;  %p1785_p13 = scmp.lt.s32.totalorder %s220_s12, %s1783_s9 }
  0x43   : > { %p1780_p9 = pnand %p1778_p3, %p1766_p0  ;;  %p1786_p5 = scmp.lt.s32.totalorder %s1784_s11, %s1777_s8 }
  0x45   : > { %p1781_p7 = pneg %p1780_p9  ;;  %p1787_p4 = por %p1786_p5, %p1785_p13 }
  0x47   : > { %p1788_p8 = pnand %p1787_p4, %p1781_p7 }
  0x49   : > { %1791 = shalt.err (!%p1788_p8)
}
  0x4a   : > { %1617 = dma.hbm_to_vmem [thread:$0]  (!%p1999_p11), %s1997_s10, 128, %s220_s12, %s209_s14  }
  0x4b   : > { %p2352_p10 = scmp.ne.s32.totalorder %s2347_s26, 0 }
  0x4c   : > { %s2020_s15 = sand.u32 (!%p2352_p10), 1, %s1852_s19   ;;  %p2353_p4 = scmp.ne.s32.totalorder (!%p2352_p10), %s2345_s24, 0 }
  0x4d   : > { %228 = sbr.rel (%p2352_p10) target bundleno = 777 (0x309), region = 40  ;;  %s1481_s16 = sshll.u32 (!%p2352_p10), %s2020_s15, 3 }
  0x4e   : > { %s231_s23 = scalar_lea.sflag (!%p2352_p10), [#allocation3], %s2020_s15  ;;  %s234_s27 = scalar_lea.vmem (!%p2352_p10), [#allocation2], %s1481_s16 }
  0x52   : > { %1835 = dma.done.wait (%p2353_p4), %s231_s23, 128  }
  0x53   : > { %1837 = vsyncadd (%p2353_p4), %s231_s23, 4294967168  ;;  %p2354_p8 = scmp.eq.s32.totalorder %s1923_s22, 0 }
  0x55   : > { %1839 = dma.done.wait (%p2354_p8), [#allocation6], 4096   ;;  %p2355_p7 = pmov %p2354_p8 }
  0x56   : > { %v303_v0 = vlaneseq  ;;  %v2043_v4 = vld [vmem:[%s234_s27] sm:$0xff]  ;;  %v1672_v17 = vld [vmem:[#allocation5 + $0x68] sm:$0xff]   ;;  %v1674_v22 = vld [vmem:[#allocation5 + $0x60] sm:$0xff]   ;;  %s1544_s13 = sshll.u32 %s1923_s22, 7  ;;  %s268_s14 = scalar_lea.vmem [#allocation8], %s1481_s16 }
  0x57   : > { %1841 = vsyncadd (%p2355_p7), [#allocation6], 4294963200  ;;  %v2048_v6 = vadd.s32 30, %v2043_v4  ;;  %v1668_v7 = vld [vmem:[#allocation5 + $0x78] sm:$0xff]   ;;  %v2055_v11 = vadd.s32 60, %v2043_v4  ;;  %v1670_v12 = vld [vmem:[#allocation5 + $0x70] sm:$0xff]   ;;  %s2297_s29 = scalar_lea.hbm %s2340_s5, %s1544_s13 }
  0x58   : > { %v2035_v1 = vshrl.u32 %v303_v0, 7  ;;  %v1669_v8 = vld [vmem:[#allocation5 + $0x38] sm:$0xff]   ;;  %1555 = vmatprep.subr.bf16.mxu0 %v1668_v7  ;;  %v1671_v14 = vld [vmem:[#allocation5 + $0x30] sm:$0xff]   ;;  %v2062_v16 = vadd.s32 90, %v2043_v4  ;;  %v2067_v19 = vadd.s32 120, %v2043_v4  ;;  %v1673_v20 = vld [vmem:[#allocation5 + $0x28] sm:$0xff]  }
  0x59   : > { %1556 = vmatpush3.bf16.msra.mxu0 %v1669_v8  ;;  %v1675_v25 = vld [vmem:[#allocation5 + $0x20] sm:$0xff]   ;;  %v1676_v27 = vld [vmem:[#allocation5 + $0x58] sm:$0xff]   ;;  %v1678_v31 = vld [vmem:[#allocation5 + $0x50] sm:$0xff]   ;;  %s1384_s6 = sshll.u32 %s268_s14, 4  ;;  %s1371_s22 = scalar_lea.sflag [#allocation4], %s2020_s15  ;;  %s1385_s6 = int_to_ptr.vmem [resolvable:$true] %s1384_s6 }
  0x5a   : > { %v2038_v2 = vsub.s32 0, %v2035_v1  ;;  %v2041_v3 = vsub.s32 1, %v2035_v1  ;;  %1557 = vmatprep.subr.bf16.mxu0 %v1670_v12  ;;  %v322_v24 = vsub.s32 2, %v2035_v1  ;;  %v1677_v28 = vld [vmem:[#allocation5 + $0x18] sm:$0xff]   ;;  %v329_v30 = vsub.s32 3, %v2035_v1  ;;  %v1679_v34 = vld [vmem:[#allocation5 + $0x10] sm:$0xff]  }
  0x5b   : > { %v1680_v36 = vld [vmem:[#allocation5 + $0x48] sm:$0xff]   ;;  %v1682_v40 = vld [vmem:[#allocation5 + $0x40] sm:$0xff]   ;;  %v336_v46 = vsub.s32 4, %v2035_v1  ;;  %v343_v48 = vsub.s32 5, %v2035_v1  ;;  %v350_v58 = vsub.s32 6, %v2035_v1  ;;  %v357_v60 = vsub.s32 7, %v2035_v1 }
  0x5c   : > { %v309_v5 = vrot.slane %v2043_v4, %v2038_v2  ;;  %v382_v9 = vrot.slane %v2048_v6, %v2038_v2  ;;  %v316_v10 = vrot.slane %v2043_v4, %v2041_v3  ;;  %v390_v13 = vrot.slane %v2048_v6, %v2041_v3  ;;  %v1681_v38 = vld [vmem:[#allocation5 + $0x8] sm:$0xff]   ;;  %v1683_v42 = vld [vmem:[#allocation5] sm:$0xff]   ;;  %s1792_s9 = scalar_lea.vmem %s1385_s6, 128  ;;  %p2356_p0 = scmp.ne.s32.totalorder %s2350_s30, 0 }
  0x5d   : > { %v479_v15 = vrot.slane %v2055_v11, %v2038_v2  ;;  %v487_v18 = vrot.slane %v2055_v11, %v2041_v3  ;;  %1558 = vmatpush3.bf16.msra.mxu0 %v1671_v14  ;;  %v576_v21 = vrot.slane %v2062_v16, %v2038_v2  ;;  %v584_v23 = vrot.slane %v2062_v16, %v2041_v3  ;;  %p1793_p11 = scmp.ne.s32.totalorder %s1385_s6, %s1792_s9  ;;  %s1871_s11 = smov [#allocation8]  }
  0x5e   : > { %311 = vbcast.lane.b32.xlu0 %v309_v5, 256  ;;  %385 = vbcast.lane.b32.xlu1 %v382_v9, 257  ;;  %v673_v26 = vrot.slane %v2067_v19, %v2038_v2  ;;  %v681_v29 = vrot.slane %v2067_v19, %v2041_v3  ;;  %v323_v32 = vrot.slane %v2043_v4, %v322_v24  ;;  %s1796_s16 = sshll.u32 %s1871_s11, 4  ;;  %s1797_s16 = int_to_ptr.vmem [resolvable:$false] %s1796_s16 }
  0x5f   : > { %1559 = vmatprep.subr.bf16.mxu0 %v1672_v17  ;;  %v330_v33 = vrot.slane %v2043_v4, %v329_v30  ;;  %v398_v35 = vrot.slane %v2048_v6, %v322_v24  ;;  %v406_v37 = vrot.slane %v2048_v6, %v329_v30  ;;  %v495_v39 = vrot.slane %v2055_v11, %v322_v24  ;;  %p1794_p1 = pnand %p1793_p11, %p2356_p0  ;;  %s1798_s23 = scalar_lea.vmem %s1797_s16, 256 }
  0x60   : > { %v503_v41 = vrot.slane %v2055_v11, %v329_v30  ;;  %v592_v43 = vrot.slane %v2062_v16, %v322_v24  ;;  %v600_v44 = vrot.slane %v2062_v16, %v329_v30  ;;  %v689_v45 = vrot.slane %v2067_v19, %v322_v24  ;;  %p1799_p6 = scmp.lt.s32.totalorder %s1385_s6, %s1797_s16  ;;  %p1800_p12 = scmp.lt.s32.totalorder %s1798_s23, %s1792_s9 }
  0x61   : > { %1560 = vmatpush3.bf16.msra.mxu0 %v1673_v20  ;;  %v697_v47 = vrot.slane %v2067_v19, %v329_v30  ;;  %v337_v49 = vrot.slane %v2043_v4, %v336_v46  ;;  %v344_v50 = vrot.slane %v2043_v4, %v343_v48  ;;  %v414_v51 = vrot.slane %v2048_v6, %v336_v46  ;;  %p1795_p2 = pneg %p1794_p1 }
  0x62   : > { %318 = vbcast.lane.b32.xlu0 %v316_v10, 256  ;;  %393 = vbcast.lane.b32.xlu1 %v390_v13, 257  ;;  %v422_v52 = vrot.slane %v2048_v6, %v343_v48  ;;  %v511_v53 = vrot.slane %v2055_v11, %v336_v46  ;;  %v519_v54 = vrot.slane %v2055_v11, %v343_v48  ;;  %p1801_p3 = por %p1800_p12, %p1799_p6 }
  0x63   : > { %1561 = vmatprep.subr.bf16.mxu0 %v1674_v22  ;;  %v608_v55 = vrot.slane %v2062_v16, %v336_v46  ;;  %v616_v56 = vrot.slane %v2062_v16, %v343_v48  ;;  %v705_v57 = vrot.slane %v2067_v19, %v336_v46  ;;  %v713_v59 = vrot.slane %v2067_v19, %v343_v48 }
  0x64   : > { %v351_v61 = vrot.slane %v2043_v4, %v350_v58  ;;  %v358_v62 = vrot.slane %v2043_v4, %v357_v60  ;;  %v430_v63 = vrot.slane %v2048_v6, %v350_v58  ;;  %v438_v5 = vrot.slane %v2048_v6, %v357_v60  ;;  %p1802_p9 = pnand %p1801_p3, %p1795_p2 }
  0x65   : > { %1562 = vmatpush3.bf16.msra.mxu0 %v1675_v25  ;;  %v527_v7 = vrot.slane %v2055_v11, %v350_v58  ;;  %v535_v8 = vrot.slane %v2055_v11, %v357_v60  ;;  %v624_v1 = vrot.slane %v2062_v16, %v350_v58  ;;  %v632_v9 = vrot.slane %v2062_v16, %v357_v60 }
  0x66   : > { %482 = vbcast.lane.b32.xlu0 %v479_v15, 258  ;;  %490 = vbcast.lane.b32.xlu1 %v487_v18, 258  ;;  %v721_v4 = vrot.slane %v2067_v19, %v350_v58  ;;  %v729_v10 = vrot.slane %v2067_v19, %v357_v60  ;;  %v2114_v6 = vand.u32 127, %v303_v0  ;;  %v1869_v22 = vmov 0.0  }
  0x67   : > { %1563 = vmatprep.subr.bf16.mxu0 %v1676_v27 }
  0x68   : > { %v2117_v12 = vadd.s32 128, %v2114_v6 }
  0x69   : > { %1564 = vmatpush3.bf16.msra.mxu0 %v1677_v28 }
  0x6a   : > { %579 = vbcast.lane.b32.xlu0 %v576_v21, 259  ;;  %587 = vbcast.lane.b32.xlu1 %v584_v23, 259 }
  0x6b   : > { %1565 = vmatprep.subr.bf16.mxu0 %v1678_v31 }
  0x6d   : > { %1566 = vmatpush3.bf16.msra.mxu0 %v1679_v34 }
  0x6e   : > { %676 = vbcast.lane.b32.xlu0 %v673_v26, 260  ;;  %684 = vbcast.lane.b32.xlu1 %v681_v29, 260 }
  0x6f   : > { %1567 = vmatprep.subr.bf16.mxu0 %v1680_v36 }
  0x71   : > { %1568 = vmatpush3.bf16.msra.mxu0 %v1681_v38 }
  0x72   : > { %325 = vbcast.lane.b32.xlu0 %v323_v32, 256  ;;  %332 = vbcast.lane.b32.xlu1 %v330_v33, 256 }
  0x73   : > { %1569 = vmatprep.subr.bf16.mxu0 %v1682_v40 }
  0x75   : > { %1570 = vmatpush3.bf16.msra.mxu0 %v1683_v42 }
  0x76   : > { %401 = vbcast.lane.b32.xlu0 %v398_v35, 257  ;;  %409 = vbcast.lane.b32.xlu1 %v406_v37, 257 }
  0x7a   : > { %498 = vbcast.lane.b32.xlu0 %v495_v39, 258  ;;  %506 = vbcast.lane.b32.xlu1 %v503_v41, 258 }
  0x7e   : > { %595 = vbcast.lane.b32.xlu0 %v592_v43, 259  ;;  %603 = vbcast.lane.b32.xlu1 %v600_v44, 259 }
  0x82   : > { %692 = vbcast.lane.b32.xlu0 %v689_v45, 260  ;;  %700 = vbcast.lane.b32.xlu1 %v697_v47, 260 }
  0x86   : > { %339 = vbcast.lane.b32.xlu0 %v337_v49, 256  ;;  %346 = vbcast.lane.b32.xlu1 %v344_v50, 256 }
  0x8a   : > { %417 = vbcast.lane.b32.xlu0 %v414_v51, 257  ;;  %425 = vbcast.lane.b32.xlu1 %v422_v52, 257 }
  0x8e   : > { %514 = vbcast.lane.b32.xlu0 %v511_v53, 258  ;;  %522 = vbcast.lane.b32.xlu1 %v519_v54, 258 }
  0x92   : > { %611 = vbcast.lane.b32.xlu0 %v608_v55, 259  ;;  %619 = vbcast.lane.b32.xlu1 %v616_v56, 259 }
  0x96   : > { %708 = vbcast.lane.b32.xlu0 %v705_v57, 260  ;;  %716 = vbcast.lane.b32.xlu1 %v713_v59, 260 }
  0x9a   : > { %353 = vbcast.lane.b32.xlu0 %v351_v61, 256  ;;  %360 = vbcast.lane.b32.xlu1 %v358_v62, 256 }
  0x9e   : > { %433 = vbcast.lane.b32.xlu0 %v430_v63, 257  ;;  %441 = vbcast.lane.b32.xlu1 %v438_v5, 257 }
  0xa2   : > { %530 = vbcast.lane.b32.xlu0 %v527_v7, 258  ;;  %538 = vbcast.lane.b32.xlu1 %v535_v8, 258 }
  0xa6   : > { %627 = vbcast.lane.b32.xlu0 %v624_v1, 259  ;;  %635 = vbcast.lane.b32.xlu1 %v632_v9, 259 }
  0xaa   : > { %724 = vbcast.lane.b32.xlu0 %v721_v4, 260  ;;  %732 = vbcast.lane.b32.xlu1 %v729_v10, 260 }
  0xd0   : > { %v312_v11 = vpop.permute.xlu0 %311  ;;  %v386_v13 = vpop.permute.xlu1 %385 }
  0xd1   : > { %vm362_vm0 = vcmp.eq.s32.totalorder %v2114_v6, %v312_v11  ;;  %vm443_vm1 = vcmp.eq.s32.totalorder %v2114_v6, %v386_v13  ;;  %vm363_vm2 = vcmp.eq.s32.totalorder %v2117_v12, %v312_v11  ;;  %vm444_vm3 = vcmp.eq.s32.totalorder %v2117_v12, %v386_v13 }
  0xd2   : > { %vm459_vm5 = vmor %vm362_vm0, %vm443_vm1 }
  0xd3   : > { %vm460_vm7 = vmor %vm363_vm2, %vm444_vm3 }
  0xd4   : > { %v319_v14 = vpop.permute.xlu0 %318  ;;  %v394_v0 = vpop.permute.xlu1 %393 }
  0xd5   : > { %vm364_vm4 = vcmp.eq.s32.totalorder %v2114_v6, %v319_v14  ;;  %vm365_vm6 = vcmp.eq.s32.totalorder %v2117_v12, %v319_v14  ;;  %vm445_vm8 = vcmp.eq.s32.totalorder %v2114_v6, %v394_v0  ;;  %vm446_vm9 = vcmp.eq.s32.totalorder %v2117_v12, %v394_v0 }
  0xd6   : > { %vm461_vm10 = vmor %vm364_vm4, %vm445_vm8 }
  0xd7   : > { %vm462_vm11 = vmor %vm365_vm6, %vm446_vm9 }
  0xd8   : > { %v483_v15 = vpop.permute.xlu0 %482  ;;  %v491_v16 = vpop.permute.xlu1 %490 }
  0xd9   : > { %vm540_vm12 = vcmp.eq.s32.totalorder %v2114_v6, %v483_v15  ;;  %vm541_vm13 = vcmp.eq.s32.totalorder %v2117_v12, %v483_v15  ;;  %vm542_vm0 = vcmp.eq.s32.totalorder %v2114_v6, %v491_v16  ;;  %vm543_vm1 = vcmp.eq.s32.totalorder %v2117_v12, %v491_v16  ;;  %v1684_v16 = vld [vmem:[#allocation7 + $0x74] ss:$8 sps:$4 sm:$0xff]  }
  0xda   : > { %vm556_vm14 = vmor %vm459_vm5, %vm540_vm12  ;;  %1249 = vmatprep.subr.bf16.mxu1 %v1684_v16 }
  0xdb   : > { %vm557_vm15 = vmor %vm460_vm7, %vm541_vm13 }
  0xdc   : > { %vm558_vm2 = vmor %vm461_vm10, %vm542_vm0  ;;  %v580_v17 = vpop.permute.xlu0 %579  ;;  %v588_v18 = vpop.permute.xlu1 %587 }
  0xdd   : > { %vm559_vm3 = vmor %vm462_vm11, %vm543_vm1  ;;  %vm637_vm4 = vcmp.eq.s32.totalorder %v2114_v6, %v580_v17  ;;  %vm638_vm8 = vcmp.eq.s32.totalorder %v2117_v12, %v580_v17  ;;  %vm639_vm5 = vcmp.eq.s32.totalorder %v2114_v6, %v588_v18  ;;  %vm640_vm12 = vcmp.eq.s32.totalorder %v2117_v12, %v588_v18  ;;  %v1686_v17 = vld [vmem:[#allocation7 + $0x70] ss:$8 sps:$4 sm:$0xff]   ;;  %v1690_v18 = vld [vmem:[#allocation7 + $0x54] ss:$8 sps:$4 sm:$0xff]  }
  0xde   : > { %vm653_vm6 = vmor %vm556_vm14, %vm637_vm4  ;;  %1250 = vmatpush1.bf16.msra.mxu1 %v1686_v17 }
  0xdf   : > { %vm654_vm9 = vmor %vm557_vm15, %vm638_vm8 }
  0xe0   : > { %vm655_vm7 = vmor %vm558_vm2, %vm639_vm5  ;;  %v677_v19 = vpop.permute.xlu0 %676  ;;  %v685_v20 = vpop.permute.xlu1 %684 }
  0xe1   : > { %vm656_vm13 = vmor %vm559_vm3, %vm640_vm12  ;;  %vm734_vm0 = vcmp.eq.s32.totalorder %v2114_v6, %v677_v19  ;;  %vm735_vm10 = vcmp.eq.s32.totalorder %v2117_v12, %v677_v19  ;;  %vm736_vm11 = vcmp.eq.s32.totalorder %v2114_v6, %v685_v20  ;;  %vm737_vm4 = vcmp.eq.s32.totalorder %v2117_v12, %v685_v20  ;;  %v1692_v19 = vld [vmem:[#allocation7 + $0x50] ss:$8 sps:$4 sm:$0xff]   ;;  %v1693_v20 = vld [vmem:[#allocation7 + $0x44] ss:$8 sps:$4 sm:$0xff]  }
  0xe2   : > { %vm750_vm1 = vmor %vm653_vm6, %vm734_vm0 }
  0xe3   : > { %vm751_vm14 = vmor %vm654_vm9, %vm735_vm10  ;;  %v1485_v23 = vsel %vm750_vm1, 1.0, %v1869_v22 }
  0xe4   : > { %vm752_vm8 = vmor %vm655_vm7, %vm736_vm11  ;;  %v326_v21 = vpop.permute.xlu0 %325  ;;  %v333_v25 = vpop.permute.xlu1 %332  ;;  %v1486_v26 = vsel %vm751_vm14, 1.0, %v1869_v22 }
  0xe5   : > { %v1487_v24 = vsel %vm752_vm8, 1.0, %v1869_v22  ;;  %vm753_vm15 = vmor %vm656_vm13, %vm737_vm4  ;;  %vm366_vm2 = vcmp.eq.s32.totalorder %v2114_v6, %v326_v21  ;;  %vm367_vm9 = vcmp.eq.s32.totalorder %v2117_v12, %v326_v21  ;;  %vm368_vm12 = vcmp.eq.s32.totalorder %v2114_v6, %v333_v25  ;;  %v1695_v21 = vld [vmem:[#allocation7 + $0x40] ss:$8 sps:$4 sm:$0xff]  }
  0xe6   : > { %v1488_v27 = vsel %vm753_vm15, 1.0, %v1869_v22  ;;  %v1547_v28 = vpack.c.bf16 %v1487_v24, %v1485_v23  ;;  %vm369_vm10 = vcmp.eq.s32.totalorder %v2117_v12, %v333_v25  ;;  %v1698_v23 = vld [vmem:[#allocation7 + $0x30] ss:$8 sps:$4 sm:$0xff]   ;;  %v1699_v24 = vld [vmem:[#allocation7 + $0x24] ss:$8 sps:$4 sm:$0xff]  }
  0xe7   : > { %v1548_v29 = vpack.c.bf16 %v1488_v27, %v1486_v26  ;;  %v1701_v25 = vld [vmem:[#allocation7 + $0x20] ss:$8 sps:$4 sm:$0xff]   ;;  %v1702_v26 = vld [vmem:[#allocation7 + $0x14] ss:$8 sps:$4 sm:$0xff]   ;;  %v1704_v27 = vld [vmem:[#allocation7 + $0x10] ss:$8 sps:$4 sm:$0xff]  }
  0xe8   : > { %v402_v30 = vpop.permute.xlu0 %401  ;;  %v410_v31 = vpop.permute.xlu1 %409 }
  0xe9   : > { %990 = vmatprep.mubr.bf16.mxu0 %v1548_v29  ;;  %vm447_vm3 = vcmp.eq.s32.totalorder %v2114_v6, %v402_v30  ;;  %vm448_vm6 = vcmp.eq.s32.totalorder %v2117_v12, %v402_v30  ;;  %vm449_vm13 = vcmp.eq.s32.totalorder %v2114_v6, %v410_v31  ;;  %vm450_vm0 = vcmp.eq.s32.totalorder %v2117_v12, %v410_v31  ;;  %v1707_v30 = vld [vmem:[#allocation7] ss:$8 sps:$4 sm:$0xff]  }
  0xea   : > { %vm463_vm5 = vmor %vm366_vm2, %vm447_vm3  ;;  %991 = vmatmul.mubr.bf16.vlgmr.msra.gmra.mxu0 %v1547_v28  ;;  %v1705_v28 = vld [vmem:[#allocation7 + $0x4] ss:$8 sps:$4 sm:$0xff]   ;;  %v1870_v29 = vmov 0  }
  0xeb   : > { %vm464_vm7 = vmor %vm367_vm9, %vm448_vm6  ;;  %1281 = vmatprep.mubr.bf16.mxu1 %v1870_v29 }
  0xec   : > { %vm465_vm1 = vmor %vm368_vm12, %vm449_vm13  ;;  %v499_v32 = vpop.permute.xlu0 %498  ;;  %v507_v33 = vpop.permute.xlu1 %506 }
  0xed   : > { %vm466_vm11 = vmor %vm369_vm10, %vm450_vm0  ;;  %vm544_vm4 = vcmp.eq.s32.totalorder %v2114_v6, %v499_v32  ;;  %vm545_vm14 = vcmp.eq.s32.totalorder %v2117_v12, %v499_v32  ;;  %vm546_vm2 = vcmp.eq.s32.totalorder %v2114_v6, %v507_v33  ;;  %vm547_vm3 = vcmp.eq.s32.totalorder %v2117_v12, %v507_v33 }
  0xee   : > { %vm560_vm8 = vmor %vm463_vm5, %vm544_vm4 }
  0xef   : > { %vm561_vm15 = vmor %vm464_vm7, %vm545_vm14 }
  0xf0   : > { %vm562_vm6 = vmor %vm465_vm1, %vm546_vm2  ;;  %v596_v34 = vpop.permute.xlu0 %595  ;;  %v604_v35 = vpop.permute.xlu1 %603 }
  0xf1   : > { %vm563_vm9 = vmor %vm466_vm11, %vm547_vm3  ;;  %vm641_vm12 = vcmp.eq.s32.totalorder %v2114_v6, %v596_v34  ;;  %vm642_vm13 = vcmp.eq.s32.totalorder %v2117_v12, %v596_v34  ;;  %vm643_vm4 = vcmp.eq.s32.totalorder %v2114_v6, %v604_v35  ;;  %vm644_vm5 = vcmp.eq.s32.totalorder %v2117_v12, %v604_v35 }
  0xf2   : > { %vm657_vm0 = vmor %vm560_vm8, %vm641_vm12 }
  0xf3   : > { %vm658_vm10 = vmor %vm561_vm15, %vm642_vm13 }
  0xf4   : > { %vm659_vm7 = vmor %vm562_vm6, %vm643_vm4  ;;  %v693_v36 = vpop.permute.xlu0 %692  ;;  %v701_v37 = vpop.permute.xlu1 %700 }
  0xf5   : > { %vm660_vm14 = vmor %vm563_vm9, %vm644_vm5  ;;  %vm738_vm1 = vcmp.eq.s32.totalorder %v2114_v6, %v693_v36  ;;  %vm739_vm2 = vcmp.eq.s32.totalorder %v2117_v12, %v693_v36  ;;  %vm740_vm8 = vcmp.eq.s32.totalorder %v2114_v6, %v701_v37  ;;  %vm741_vm12 = vcmp.eq.s32.totalorder %v2117_v12, %v701_v37 }
  0xf6   : > { %vm754_vm3 = vmor %vm657_vm0, %vm738_vm1 }
  0xf7   : > { %vm755_vm11 = vmor %vm658_vm10, %vm739_vm2  ;;  %v1489_v39 = vsel %vm754_vm3, 1.0, %v1869_v22 }
  0xf8   : > { %vm756_vm13 = vmor %vm659_vm7, %vm740_vm8  ;;  %v340_v38 = vpop.permute.xlu0 %339  ;;  %v1490_v41 = vsel %vm755_vm11, 1.0, %v1869_v22  ;;  %v347_v43 = vpop.permute.xlu1 %346 }
  0xf9   : > { %vm757_vm15 = vmor %vm660_vm14, %vm741_vm12  ;;  %v1491_v40 = vsel %vm756_vm13, 1.0, %v1869_v22  ;;  %vm370_vm6 = vcmp.eq.s32.totalorder %v2114_v6, %v340_v38  ;;  %vm371_vm10 = vcmp.eq.s32.totalorder %v2117_v12, %v340_v38  ;;  %vm372_vm5 = vcmp.eq.s32.totalorder %v2114_v6, %v347_v43 }
  0xfa   : > { %v1492_v42 = vsel %vm757_vm15, 1.0, %v1869_v22  ;;  %v1549_v44 = vpack.c.bf16 %v1491_v40, %v1489_v39  ;;  %vm373_vm2 = vcmp.eq.s32.totalorder %v2117_v12, %v347_v43 }
  0xfb   : > { %v1550_v45 = vpack.c.bf16 %v1492_v42, %v1490_v41 }
  0xfc   : > { %v418_v46 = vpop.permute.xlu0 %417  ;;  %v426_v47 = vpop.permute.xlu1 %425 }
  0xfd   : > { %998 = vmatprep.mubr.bf16.mxu0 %v1550_v45  ;;  %vm451_vm9 = vcmp.eq.s32.totalorder %v2114_v6, %v418_v46  ;;  %vm452_vm0 = vcmp.eq.s32.totalorder %v2117_v12, %v418_v46  ;;  %vm453_vm14 = vcmp.eq.s32.totalorder %v2114_v6, %v426_v47  ;;  %vm454_vm1 = vcmp.eq.s32.totalorder %v2117_v12, %v426_v47 }
  0xfe   : > { %vm467_vm4 = vmor %vm370_vm6, %vm451_vm9  ;;  %999 = vmatmul.mubr.bf16.gmra.mxu0 %v1549_v44 }
  0xff   : > { %vm468_vm7 = vmor %vm371_vm10, %vm452_vm0 }
 0x100   : > { %vm469_vm3 = vmor %vm372_vm5, %vm453_vm14  ;;  %v515_v48 = vpop.permute.xlu0 %514  ;;  %v523_v49 = vpop.permute.xlu1 %522 }
 0x101   : > { %vm470_vm11 = vmor %vm373_vm2, %vm454_vm1  ;;  %vm548_vm8 = vcmp.eq.s32.totalorder %v2114_v6, %v515_v48  ;;  %vm549_vm12 = vcmp.eq.s32.totalorder %v2117_v12, %v515_v48  ;;  %vm550_vm6 = vcmp.eq.s32.totalorder %v2114_v6, %v523_v49  ;;  %vm551_vm9 = vcmp.eq.s32.totalorder %v2117_v12, %v523_v49 }
 0x102   : > { %vm564_vm13 = vmor %vm467_vm4, %vm548_vm8 }
 0x103   : > { %vm565_vm15 = vmor %vm468_vm7, %vm549_vm12 }
 0x104   : > { %vm566_vm0 = vmor %vm469_vm3, %vm550_vm6  ;;  %v612_v50 = vpop.permute.xlu0 %611  ;;  %v620_v51 = vpop.permute.xlu1 %619 }
 0x105   : > { %vm567_vm10 = vmor %vm470_vm11, %vm551_vm9  ;;  %vm645_vm5 = vcmp.eq.s32.totalorder %v2114_v6, %v612_v50  ;;  %vm646_vm14 = vcmp.eq.s32.totalorder %v2117_v12, %v612_v50  ;;  %vm647_vm4 = vcmp.eq.s32.totalorder %v2114_v6, %v620_v51  ;;  %vm648_vm8 = vcmp.eq.s32.totalorder %v2117_v12, %v620_v51 }
 0x106   : > { %vm661_vm1 = vmor %vm564_vm13, %vm645_vm5 }
 0x107   : > { %vm662_vm2 = vmor %vm565_vm15, %vm646_vm14 }
 0x108   : > { %vm663_vm7 = vmor %vm566_vm0, %vm647_vm4  ;;  %v709_v52 = vpop.permute.xlu0 %708  ;;  %v717_v53 = vpop.permute.xlu1 %716 }
 0x109   : > { %vm664_vm12 = vmor %vm567_vm10, %vm648_vm8  ;;  %vm742_vm3 = vcmp.eq.s32.totalorder %v2114_v6, %v709_v52  ;;  %vm743_vm6 = vcmp.eq.s32.totalorder %v2117_v12, %v709_v52  ;;  %vm744_vm5 = vcmp.eq.s32.totalorder %v2114_v6, %v717_v53  ;;  %vm745_vm13 = vcmp.eq.s32.totalorder %v2117_v12, %v717_v53 }
 0x10a   : > { %vm758_vm9 = vmor %vm661_vm1, %vm742_vm3 }
 0x10b   : > { %vm759_vm11 = vmor %vm662_vm2, %vm743_vm6  ;;  %v1493_v55 = vsel %vm758_vm9, 1.0, %v1869_v22 }
 0x10c   : > { %vm760_vm14 = vmor %vm663_vm7, %vm744_vm5  ;;  %v354_v54 = vpop.permute.xlu0 %353  ;;  %v1494_v57 = vsel %vm759_vm11, 1.0, %v1869_v22  ;;  %v361_v59 = vpop.permute.xlu1 %360 }
 0x10d   : > { %vm761_vm15 = vmor %vm664_vm12, %vm745_vm13  ;;  %v1495_v56 = vsel %vm760_vm14, 1.0, %v1869_v22  ;;  %vm374_vm0 = vcmp.eq.s32.totalorder %v2114_v6, %v354_v54  ;;  %vm375_vm2 = vcmp.eq.s32.totalorder %v2117_v12, %v354_v54  ;;  %vm376_vm8 = vcmp.eq.s32.totalorder %v2114_v6, %v361_v59 }
 0x10e   : > { %v1496_v58 = vsel %vm761_vm15, 1.0, %v1869_v22  ;;  %v1551_v60 = vpack.c.bf16 %v1495_v56, %v1493_v55  ;;  %vm377_vm6 = vcmp.eq.s32.totalorder %v2117_v12, %v361_v59 }
 0x10f   : > { %v1552_v61 = vpack.c.bf16 %v1496_v58, %v1494_v57 }
 0x110   : > { %v434_v62 = vpop.permute.xlu0 %433  ;;  %v442_v63 = vpop.permute.xlu1 %441 }
 0x111   : > { %1006 = vmatprep.mubr.bf16.mxu0 %v1552_v61  ;;  %vm455_vm10 = vcmp.eq.s32.totalorder %v2114_v6, %v434_v62  ;;  %vm456_vm1 = vcmp.eq.s32.totalorder %v2117_v12, %v434_v62  ;;  %vm457_vm12 = vcmp.eq.s32.totalorder %v2114_v6, %v442_v63  ;;  %vm458_vm3 = vcmp.eq.s32.totalorder %v2117_v12, %v442_v63 }
 0x112   : > { %vm471_vm4 = vmor %vm374_vm0, %vm455_vm10  ;;  %1007 = vmatmul.mubr.bf16.gmra.mxu0 %v1551_v60 }
 0x113   : > { %vm472_vm7 = vmor %vm375_vm2, %vm456_vm1 }
 0x114   : > { %vm473_vm9 = vmor %vm376_vm8, %vm457_vm12  ;;  %v531_v5 = vpop.permute.xlu0 %530  ;;  %v539_v7 = vpop.permute.xlu1 %538 }
 0x115   : > { %vm474_vm11 = vmor %vm377_vm6, %vm458_vm3  ;;  %vm552_vm5 = vcmp.eq.s32.totalorder %v2114_v6, %v531_v5  ;;  %vm553_vm13 = vcmp.eq.s32.totalorder %v2117_v12, %v531_v5  ;;  %vm554_vm0 = vcmp.eq.s32.totalorder %v2114_v6, %v539_v7  ;;  %vm555_vm10 = vcmp.eq.s32.totalorder %v2117_v12, %v539_v7 }
 0x116   : > { %vm568_vm14 = vmor %vm471_vm4, %vm552_vm5 }
 0x117   : > { %vm569_vm15 = vmor %vm472_vm7, %vm553_vm13 }
 0x118   : > { %vm570_vm1 = vmor %vm473_vm9, %vm554_vm0  ;;  %v628_v8 = vpop.permute.xlu0 %627  ;;  %v636_v1 = vpop.permute.xlu1 %635 }
 0x119   : > { %vm571_vm2 = vmor %vm474_vm11, %vm555_vm10  ;;  %vm649_vm8 = vcmp.eq.s32.totalorder %v2114_v6, %v628_v8  ;;  %vm650_vm12 = vcmp.eq.s32.totalorder %v2117_v12, %v628_v8  ;;  %vm651_vm6 = vcmp.eq.s32.totalorder %v2114_v6, %v636_v1  ;;  %vm652_vm4 = vcmp.eq.s32.totalorder %v2117_v12, %v636_v1 }
 0x11a   : > { %vm665_vm3 = vmor %vm568_vm14, %vm649_vm8 }
 0x11b   : > { %vm666_vm5 = vmor %vm569_vm15, %vm650_vm12 }
 0x11c   : > { %v725_v9 = vpop.permute.xlu0 %724  ;;  %vm667_vm7 = vmor %vm570_vm1, %vm651_vm6  ;;  %v733_v4 = vpop.permute.xlu1 %732  ;;  %vm1147_vm1 = vcmask 1041409   ;;  %vm1156_vm6 = vcmask 1044484  }
 0x11d   : > { %vm746_vm13 = vcmp.eq.s32.totalorder %v2114_v6, %v725_v9  ;;  %vm747_vm0 = vcmp.eq.s32.totalorder %v2117_v12, %v725_v9  ;;  %vm668_vm9 = vmor %vm571_vm2, %vm652_vm4  ;;  %vm748_vm8 = vcmp.eq.s32.totalorder %v2114_v6, %v733_v4  ;;  %vm749_vm14 = vcmp.eq.s32.totalorder %v2117_v12, %v733_v4  ;;  %v1687_v6 = vld [vmem:[#allocation7 + $0x64] ss:$8 sps:$4 sm:$0xff]   ;;  %v1689_v12 = vld [vmem:[#allocation7 + $0x60] ss:$8 sps:$4 sm:$0xff]  }
 0x11e   : > { %vm762_vm10 = vmor %vm665_vm3, %vm746_vm13  ;;  %1251 = vmatprep.subr.bf16.mxu1 %v1687_v6  ;;  %vm1150_vm2 = vcmask 1042434   ;;  %vm1153_vm3 = vcmask 1043459   ;;  %vm1159_vm4 = vcmask 1045509  }
 0x11f   : > { %vm763_vm11 = vmor %vm666_vm5, %vm747_vm0  ;;  %v1497_v10 = vsel %vm762_vm10, 1.0, %v1869_v22  ;;  %1252 = vmatpush1.bf16.msra.mxu1 %v1689_v12  ;;  %vm1162_vm5 = vcmask 1046534  }
 0x120   : > { %vm764_vm12 = vmor %vm667_vm7, %vm748_vm8  ;;  %v1498_v13 = vsel %vm763_vm11, 1.0, %v1869_v22  ;;  %1253 = vmatprep.subr.bf16.mxu1 %v1690_v18  ;;  %vm1165_vm7 = vcmask 1047559  }
 0x121   : > { %vm765_vm15 = vmor %vm668_vm9, %vm749_vm14  ;;  %v1499_v11 = vsel %vm764_vm12, 1.0, %v1869_v22 }
 0x122   : > { %v1500_v14 = vsel %vm765_vm15, 1.0, %v1869_v22  ;;  %v1553_v0 = vpack.c.bf16 %v1499_v11, %v1497_v10  ;;  %v1696_v22 = vld [vmem:[#allocation7 + $0x34] ss:$8 sps:$4 sm:$0xff]  }
 0x123   : > { %v1554_v15 = vpack.c.bf16 %v1500_v14, %v1498_v13  ;;  %1254 = vmatpush1.bf16.msra.mxu1 %v1692_v19 }
 0x124   : > { %1255 = vmatprep.subr.bf16.mxu1 %v1693_v20 }
 0x125   : > { %1014 = vmatprep.mubr.bf16.mxu0 %v1554_v15 }
 0x126   : > { %1015 = vmatmul.mubr.bf16.gmra.mxu0 %v1553_v0 }
 0x127   : > { %1256 = vmatpush1.bf16.msra.mxu1 %v1695_v21 }
 0x128   : > { %1257 = vmatprep.subr.bf16.mxu1 %v1696_v22 }
 0x12b   : > { %1258 = vmatpush1.bf16.msra.mxu1 %v1698_v23  ;;  %v1525_v23 = vld [vmem:[%s2337_s2] ss:$0 sm:$0xff] }
 0x12c   : > { %1259 = vmatprep.subr.bf16.mxu1 %v1699_v24 }
 0x12f   : > { %1260 = vmatpush1.bf16.msra.mxu1 %v1701_v25 }
 0x130   : > { %1261 = vmatprep.subr.bf16.mxu1 %v1702_v26 }
 0x133   : > { %1262 = vmatpush1.bf16.msra.mxu1 %v1704_v27 }
 0x134   : > { %1263 = vmatprep.subr.bf16.mxu1 %v1705_v28 }
 0x137   : > { %1264 = vmatpush1.bf16.msra.mxu1 %v1707_v30 }
 0x1aa   : > { %v1571_v31 = vpop.f32.mrf.mxu0 }
 0x1ac   : > { %v1572_v32 = vpop.f32.mrf.mxu0 }
 0x1ad   : > { %v1573_v46 = vadd.f32 %v1572_v32, %v1571_v31 }
 0x1ae   : > { %v1574_v33 = vpop.f32.mrf.mxu0 }
 0x1af   : > { %v1023_v54 = vrot.slane %v1573_v46, 4 }
 0x1b0   : > { %v1575_v34 = vpop.f32.mrf.mxu0 }
 0x1b1   : > { %v1576_v39 = vadd.f32 %v1575_v34, %v1574_v33  ;;  %v1024_v61 = vmax.f32 %v1573_v46, %v1023_v54 }
 0x1b3   : > { %v1029_v43 = vrot.slane %v1576_v39, 4  ;;  %v1025_v9 = vrot.slane %v1024_v61, 2 }
 0x1b5   : > { %v1030_v50 = vmax.f32 %v1576_v39, %v1029_v43  ;;  %v1026_v0 = vmax.f32 %v1024_v61, %v1025_v9 }
 0x1b7   : > { %v1031_v58 = vrot.slane %v1030_v50, 2  ;;  %v1027_v20 = vrot.slane %v1026_v0, 1 }
 0x1b9   : > { %v1032_v7 = vmax.f32 %v1030_v50, %v1031_v58  ;;  %v1028_v31 = vmax.f32 %v1026_v0, %v1027_v20 }
 0x1bb   : > { %v1033_v11 = vrot.slane %v1032_v7, 1 }
 0x1bd   : > { %v1034_v6 = vmax.f32 %v1032_v7, %v1033_v11 }
 0x1be   : > { %v1577_v35 = vpop.f32.mrf.mxu0 }
 0x1bf   : > { %v1079_v26 = vadd.f32 %v1525_v23, %v1034_v6 }
 0x1c0   : > { %v1578_v36 = vpop.f32.mrf.mxu0 }
 0x1c1   : > { %v1579_v40 = vadd.f32 %v1578_v36, %v1577_v35  ;;  %v2218_v36 = vmax.f32 %v1079_v26, 0.0 }
 0x1c2   : > { %v1580_v37 = vpop.f32.mrf.mxu0 }
 0x1c3   : > { %v1035_v44 = vrot.slane %v1579_v40, 4  ;;  %v1095_v46 = vpack.c.bf16 %v2218_v36, %v2218_v36 }
 0x1c4   : > { %v1581_v38 = vpop.f32.mrf.mxu0 }
 0x1c5   : > { %v1582_v41 = vadd.f32 %v1581_v38, %v1580_v37  ;;  %v1036_v52 = vmax.f32 %v1579_v40, %v1035_v44 }
 0x1c7   : > { %v1041_v47 = vrot.slane %v1582_v41, 4  ;;  %v1037_v60 = vrot.slane %v1036_v52, 2 }
 0x1c9   : > { %v1042_v55 = vmax.f32 %v1582_v41, %v1041_v47  ;;  %v1038_v1 = vmax.f32 %v1036_v52, %v1037_v60  ;;  %v1078_v41 = vadd.f32 %v1525_v23, %v1028_v31 }
 0x1cb   : > { %v1043_v62 = vrot.slane %v1042_v55, 2  ;;  %v1039_v14 = vrot.slane %v1038_v1, 1 }
 0x1cd   : > { %v1044_v4 = vmax.f32 %v1042_v55, %v1043_v62  ;;  %v1040_v18 = vmax.f32 %v1038_v1, %v1039_v14 }
 0x1cf   : > { %v1045_v15 = vrot.slane %v1044_v4, 1  ;;  %v1080_v29 = vadd.f32 %v1525_v23, %v1040_v18 }
 0x1d1   : > { %v1046_v21 = vmax.f32 %v1044_v4, %v1045_v15  ;;  %v2220_v40 = vmax.f32 %v1080_v29, 0.0 }
 0x1d2   : > { %v1583_v42 = vpop.f32.mrf.mxu0 }
 0x1d3   : > { %v1081_v32 = vadd.f32 %v1525_v23, %v1046_v21  ;;  %v1096_v50 = vpack.c.bf16 %v2220_v40, %v2220_v40 }
 0x1d4   : > { %v1584_v45 = vpop.f32.mrf.mxu0 }
 0x1d5   : > { %v1585_v48 = vadd.f32 %v1584_v45, %v1583_v42  ;;  %v2222_v42 = vmax.f32 %v1081_v32, 0.0  ;;  %v1140_v60 = vunpack.c.l.b16 %v1096_v50 }
 0x1d6   : > { %v1586_v49 = vpop.f32.mrf.mxu0 }
 0x1d7   : > { %v1047_v51 = vrot.slane %v1585_v48, 4  ;;  %v1097_v52 = vpack.c.bf16 %v2222_v42, %v2222_v42 }
 0x1d8   : > { %v1587_v53 = vpop.f32.mrf.mxu0 }
 0x1d9   : > { %v1588_v56 = vadd.f32 %v1587_v53, %v1586_v49  ;;  %v1048_v57 = vmax.f32 %v1585_v48, %v1047_v51  ;;  %v2232_v51 = vmax.f32 %v1078_v41, 0.0  ;;  %v1141_v62 = vunpack.c.l.b16 %v1097_v52 }
 0x1da   : > { %v1307_v41 = vrot.slane %v2220_v40, 6 }
 0x1db   : > { %v1053_v59 = vrot.slane %v1588_v56, 4  ;;  %v1049_v5 = vrot.slane %v1048_v57, 2  ;;  %v1094_v61 = vpack.c.bf16 %v2232_v51, %v2232_v51 }
 0x1dd   : > { %v1054_v63 = vmax.f32 %v1588_v56, %v1053_v59  ;;  %v1050_v10 = vmax.f32 %v1048_v57, %v1049_v5  ;;  %v1139_v56 = vunpack.c.l.b16 %v1095_v46  ;;  %v1138_v11 = vunpack.c.l.b16 %v1094_v61 }
 0x1df   : > { %v1055_v8 = vrot.slane %v1054_v63, 2  ;;  %v1051_v16 = vrot.slane %v1050_v10, 1 }
 0x1e1   : > { %v1056_v13 = vmax.f32 %v1054_v63, %v1055_v8  ;;  %v1052_v24 = vmax.f32 %v1050_v10, %v1051_v16  ;;  %v1146_v8 = vrot.slane %v1139_v56, 7  ;;  %v1149_v10 = vrot.slane %v1140_v60, 6 }
 0x1e3   : > { %v1057_v12 = vrot.slane %v1056_v13, 1  ;;  %v1082_v35 = vadd.f32 %v1525_v23, %v1052_v24 }
 0x1e5   : > { %v1058_v27 = vmax.f32 %v1056_v13, %v1057_v12  ;;  %v2224_v45 = vmax.f32 %v1082_v35, 0.0  ;;  %v1152_v13 = vrot.slane %v1141_v62, 5 }
 0x1e6   : > { %v1589_v17 = vpop.f32.mrf.mxu0 }
 0x1e7   : > { %v1083_v37 = vadd.f32 %v1525_v23, %v1058_v27  ;;  %v1098_v55 = vpack.c.bf16 %v2224_v45, %v2224_v45  ;;  %v1118_v27 = vld [vmem:[%s2339_s4] sm:$0x3] }
 0x1e8   : > { %v1590_v19 = vpop.f32.mrf.mxu0 }
 0x1e9   : > { %v1591_v22 = vadd.f32 %v1590_v19, %v1589_v17  ;;  %v2228_v47 = vmax.f32 %v1083_v37, 0.0  ;;  %v1142_v7 = vunpack.c.l.b16 %v1098_v55  ;;  %v1148_v17 = vsel %vm1147_vm1, %v1146_v8, %v1138_v11 }
 0x1ea   : > { %v1592_v25 = vpop.f32.mrf.mxu0  ;;  %v1151_v12 = vsel %vm1150_vm2, %v1149_v10, %v1148_v17 }
 0x1eb   : > { %v1059_v28 = vrot.slane %v1591_v22, 4  ;;  %v1099_v57 = vpack.c.bf16 %v2228_v47, %v2228_v47  ;;  %v1155_v15 = vrot.slane %v1142_v7, 4  ;;  %v1154_v20 = vsel %vm1153_vm3, %v1152_v13, %v1151_v12 }
 0x1ec   : > { %v1593_v30 = vpop.f32.mrf.mxu0 }
 0x1ed   : > { %v1060_v33 = vmax.f32 %v1591_v22, %v1059_v28  ;;  %v1594_v34 = vadd.f32 %v1593_v30, %v1592_v25  ;;  %v1143_v4 = vunpack.c.l.b16 %v1099_v57  ;;  %v1157_v21 = vsel %vm1156_vm6, %v1155_v15, %v1154_v20 }
 0x1ee   : > { %v1127_v28 = vrot.slane %v1118_v27, %v2041_v3  ;;  %v1311_v3 = vrot.slane %v2224_v45, 4 }
 0x1ef   : > { %v1061_v38 = vrot.slane %v1060_v33, 2  ;;  %v1065_v39 = vrot.slane %v1594_v34, 4  ;;  %v1158_v6 = vrot.slane %v1143_v4, 3 }
 0x1f1   : > { %v1062_v43 = vmax.f32 %v1060_v33, %v1061_v38  ;;  %v1066_v44 = vmax.f32 %v1594_v34, %v1065_v39  ;;  %v1160_v22 = vsel %vm1159_vm4, %v1158_v6, %v1157_v21  ;;  %v1123_v38 = vrot.slane %v1118_v27, %v2038_v2 }
 0x1f2   : > { %v1305_v39 = vrot.slane %v2218_v36, 7 }
 0x1f3   : > { %v1063_v48 = vrot.slane %v1062_v43, 1  ;;  %v1067_v49 = vrot.slane %v1066_v44, 2 }
 0x1f4   : > { %v1306_v46 = vsel %vm1147_vm1, %v1305_v39, %v2232_v51 }
 0x1f5   : > { %v1064_v53 = vmax.f32 %v1062_v43, %v1063_v48  ;;  %v1068_v54 = vmax.f32 %v1066_v44, %v1067_v49  ;;  %v1309_v43 = vrot.slane %v2222_v42, 5  ;;  %v1313_v48 = vrot.slane %v2228_v47, 3 }
 0x1f6   : > { %v1308_v49 = vsel %vm1150_vm2, %v1307_v41, %v1306_v46 }
 0x1f7   : > { %v1084_v58 = vadd.f32 %v1525_v23, %v1064_v53  ;;  %v1069_v59 = vrot.slane %v1068_v54, 1  ;;  %v1310_v2 = vsel %vm1153_vm3, %v1309_v43, %v1308_v49 }
 0x1f9   : > { %v2242_v63 = vmax.f32 %v1084_v58, 0.0  ;;  %v1070_v5 = vmax.f32 %v1068_v54, %v1069_v59  ;;  %v1312_v54 = vsel %vm1156_vm6, %v1311_v3, %v1310_v2 }
 0x1fa   : > { %v1314_v55 = vsel %vm1159_vm4, %v1313_v48, %v1312_v54 }
 0x1fb   : > { %v1085_v1 = vadd.f32 %v1525_v23, %v1070_v5  ;;  %v1100_v9 = vpack.c.bf16 %v2242_v63, %v2242_v63  ;;  %v1315_v50 = vrot.slane %v2242_v63, 2 }
 0x1fd   : > { %v2246_v14 = vmax.f32 %v1085_v1, 0.0  ;;  %v1144_v0 = vunpack.c.l.b16 %v1100_v9  ;;  %v1316_v56 = vsel %vm1162_vm5, %v1315_v50, %v1314_v55 }
 0x1ff   : > { %v1101_v16 = vpack.c.bf16 %v2246_v14, %v2246_v14  ;;  %v1161_v18 = vrot.slane %v1144_v0, 2  ;;  %v1317_v52 = vrot.slane %v2246_v14, 1 }
 0x201   : > { %v1145_v19 = vunpack.c.l.b16 %v1101_v16  ;;  %v1163_v24 = vsel %vm1162_vm5, %v1161_v18, %v1160_v22  ;;  %v1318_v57 = vsel %vm1165_vm7, %v1317_v52, %v1316_v56 }
 0x203   : > { %v1164_v23 = vrot.slane %v1145_v19, 1 }
 0x205   : > { %v1166_v25 = vsel %vm1165_vm7, %v1164_v23, %v1163_v24 }
 0x206   : > { %v1167_v26 = vpack.c.b16 %v1166_v25, %v1166_v25 }
 0x208   : > { %1282 = vmatmul.mubr.bf16.vlgmr.msra.gmra.mxu1 %v1167_v26 }
 0x2c8   : > { %v1283_v29 = vpop.f32.mrf.mxu1 }
 0x2c9   : > { %v1284_v44 = vadd.f32 %v1283_v29, %v1123_v38 }
 0x2ca   : > { %v1285_v30 = vpop.f32.mrf.mxu1 }
 0x2cb   : > { %v1286_v31 = vadd.f32 %v1285_v30, %v1127_v28  ;;  %v1290_v53 = vmax.f32 %v1284_v44, 0.0 }
 0x2cc   : > { %v1287_v32 = vpop.f32.mrf.mxu1 }
 0x2cd   : > { %v1542_v33 = vmul.f32 -1.442695, %v1286_v31  ;;  %v1320_v58 = vsub.f32 %v1290_v53, %v1318_v57 }
 0x2ce   : > { %v1288_v34 = vpop.f32.mrf.mxu1 }
 0x2cf   : > { %1708 = vpow2.f32 %v1542_v33 }
 0x2dc   : > { %v1709_v35 = vpop.eup %1708 }
 0x2dd   : > { %v1294_v37 = vadd.f32 1.0, %v1709_v35 }
 0x2df   : > { %1710 = vrcp.f32 %v1294_v37 }
 0x2ec   : > { %v1711_v59 = vpop.eup %1710 }
 0x2ed   : > { %v1321_v60 = vmul.f32 %v1711_v59, %v1320_v58 }
 0x2ef   : > { %v1323_v61 = vrot.slane %v1321_v60, 1  ;;  %v1324_v62 = vrot.slane %v1321_v60, 2  ;;  %v1325_v5 = vrot.slane %v1321_v60, 3  ;;  %v1326_v7 = vrot.slane %v1321_v60, 4 }
 0x2f0   : > { %v1327_v8 = vrot.slane %v1321_v60, 5  ;;  %v1328_v1 = vrot.slane %v1321_v60, 6  ;;  %v1329_v9 = vrot.slane %v1321_v60, 7  ;;  %v1338_v0 = vadd.f32 %v1321_v60, %v2232_v51 }
 0x2f1   : > { %v1339_v4 = vadd.f32 %v1323_v61, %v2218_v36  ;;  %v1340_v10 = vadd.f32 %v1324_v62, %v2220_v40  ;;  %v1341_v11 = vadd.f32 %v1325_v5, %v2222_v42  ;;  %v1342_v13 = vadd.f32 %v1326_v7, %v2224_v45 }
 0x2f2   : > { %v1343_v15 = vadd.f32 %v1327_v8, %v2228_v47  ;;  %v1344_v6 = vadd.f32 %v1328_v1, %v2242_v63  ;;  %v1345_v12 = vadd.f32 %v1329_v9, %v2246_v14 }
 0x2f3   : > { %v1354_v16 = vrot.slane %v1339_v4, 7  ;;  %v1356_v17 = vrot.slane %v1340_v10, 6  ;;  %v1358_v18 = vrot.slane %v1341_v11, 5  ;;  %v1360_v19 = vrot.slane %v1342_v13, 4 }
 0x2f4   : > { %v1362_v45 = vrot.slane %v1343_v15, 3  ;;  %v1364_v51 = vrot.slane %v1344_v6, 2  ;;  %v1366_v14 = vrot.slane %v1345_v12, 1 }
 0x2f5   : > { %v1355_v36 = vsel %vm1147_vm1, %v1354_v16, %v1338_v0 }
 0x2f6   : > { %v1357_v40 = vsel %vm1150_vm2, %v1356_v17, %v1355_v36 }
 0x2f7   : > { %v1359_v42 = vsel %vm1153_vm3, %v1358_v18, %v1357_v40 }
 0x2f8   : > { %v1361_v47 = vsel %vm1156_vm6, %v1360_v19, %v1359_v42 }
 0x2f9   : > { %v1363_v63 = vsel %vm1159_vm4, %v1362_v45, %v1361_v47 }
 0x2fa   : > { %v1365_v20 = vsel %vm1162_vm5, %v1364_v51, %v1363_v63 }
 0x2fb   : > { %v1367_v21 = vsel %vm1165_vm7, %v1366_v14, %v1365_v20 }
 0x2fc   : > { %1369 = vst [vmem:[%s268_s14] sm:$0xff] %v1367_v21 }
 0x2fd   : > { %1805 = shalt.err (!%p1802_p9)
}
 0x2fe   : > { %s1806_s27 = scalar_lea.hbm %s2297_s29, 128  ;;  %s1810_s26 = scalar_lea.hbm %s2340_s5, 256 }
 0x2ff   : > { %p1807_p13 = scmp.ne.s32.totalorder %s2297_s29, %s1806_s27  ;;  %p1811_p4 = scmp.lt.s32.totalorder %s2297_s29, %s2340_s5 }
 0x300   : > { %p1812_p8 = scmp.lt.s32.totalorder %s1810_s26, %s1806_s27 }
 0x301   : > { %p1808_p5 = pnand %p1807_p13, %p2356_p0 }
 0x302   : > { %p1813_p7 = por %p1812_p8, %p1811_p4 }
 0x303   : > { %p1809_p10 = pneg %p1808_p5 }
 0x305   : > { %p1814_p11 = pnand %p1813_p7, %p1809_p10 }
 0x307   : > { %1817 = shalt.err (!%p1814_p11)
}
 0x308   : > { %1605 = dma.vmem_to_hbm [thread:$0]  (%p2356_p0), %s1385_s6, 128, %s2297_s29, %s1371_s22  }
 0x309 PF: > { %s1396_s13 = sand.u32 1, %s1848_s18   ;;  %p2357_p1 = scmp.ne.s32.totalorder %s2346_s25, 0 }
 0x30a   : > { %p2358_p2 = scmp.ge.s32.totalorder %s1860_s21, 2  ;;  %s1397_s14 = scalar_lea.sflag [#allocation4], %s1396_s13 }
 0x30c   : > { %p1619_p6 = pnand %p2358_p2, %p2357_p1 }
 0x30e   : > { %p1620_p12 = pneg %p1619_p6 }
 0x310   : > { %1843 = dma.done.wait (%p1620_p12), %s1397_s14, 128  }
 0x311   : > { %1845 = vsyncadd (%p1620_p12), %s1397_s14, 4294967168  ;;  %p19_p3 = scmp.ge.s32.totalorder %s1974_s17, 4   ;;  %s2359_s18 = smov %s1852_s19 }
 0x312   : > { %s2360_s19 = smov %s1856_s20  ;;  %s2361_s20 = smov %s1983_s28 }
 0x313   : > { %s2362_s21 = smov %s1974_s17  ;;  %21 = sbr.rel (!%p19_p3) target bundleno = 6 (0x6), region = 93 }
 0x318   :  { %1402 = vsyncpa [#allocation3], 1 }
 0x319   :  { %1404 = vsyncpa [#allocation3 + $0x1], 1 }
 0x31a   :  { %1405 = vsyncpa [#allocation6], 1 }
 0x31b   :  { %1406 = vsyncpa [#allocation4], 1 }
 0x31c   :  { %1408 = vsyncpa [#allocation4 + $0x1], 1 }

</bundles_post_ra>
